<compile_context>
chip_gen: v7x
topology: tpu7x:2x2x1
jax: 0.10.0
libtpu: 0.0.40
codegen_flags: <defaults>
</compile_context>

<pallas_src>
import jax
import jax.numpy as jnp
from jax.experimental import pallas as pl
from jax.experimental.pallas import tpu as pltpu


# Padded (lane-aligned) output width of each of the 6 layers: 200->256, 100->128.
_PADDED_WIDTHS = (256, 256, 256, 128, 128, 1)


def _supports_bf16_elementwise():
    """v6e / v7x VPU+EUP handle packed bf16; v5e and older do not."""
    try:
        kind = jax.devices()[0].device_kind.lower()
    except Exception:
        return False
    return any(tag in kind for tag in ("v6", "v7", "6e", "7x"))


def _mlp_kernel(x_ref,
                w1_ref, b1_ref, w2_ref, b2_ref, w3_ref, b3_ref,
                w4_ref, b4_ref, w5_ref, b5_ref, w6t_ref, b6_ref,
                o_ref):
    act_dt = w1_ref.dtype    # activation-carry / matmul-input dtype (bf16 or f32)
    elem_dt = b1_ref.dtype   # bias-add + ELU dtype (bf16 on v6e/v7x, f32 on v5e/f32 mode)

    def dense_elu(h, w_ref, b_ref):
        # bf16 (or f32) operands, f32 MXU accumulation.
        acc = jnp.dot(h, w_ref[...], preferred_element_type=jnp.float32)
        z = acc.astype(elem_dt) + b_ref[...]
        # ELU(alpha=1); exp(z)-1 on the negative branch (native EUP op in f32 and
        # bf16).  The positive-branch inf is discarded by the select -> no NaN.
        z = jnp.where(z > 0, z, jnp.exp(z) - 1.0)
        return z.astype(act_dt)          # carry the activation in bf16

    h = x_ref[...].astype(act_dt)
    h = dense_elu(h, w1_ref, b1_ref)     # (bt, 256)
    h = dense_elu(h, w2_ref, b2_ref)     # (bt, 256)
    h = dense_elu(h, w3_ref, b3_ref)     # (bt, 256)
    h = dense_elu(h, w4_ref, b4_ref)     # (bt, 128)
    h = dense_elu(h, w5_ref, b5_ref)     # (bt, 128)

    # Final layer, lane-dense: h is already bf16, so the XLU transpose moves half
    # the bytes; (1,128) @ (128,bt) yields a dense (1,bt) lane row instead of a
    # masked (bt,1) single-lane store.  Bias add + sigmoid stay in f32.
    h_t = h.T                                                     # (128, bt)
    logits_t = jnp.dot(w6t_ref[...], h_t,
                       preferred_element_type=jnp.float32) + b6_ref[0]   # (1, bt)
    o_ref[...] = jax.nn.sigmoid(logits_t).astype(o_ref.dtype)


def _prepare_params(params, *, matmul_dtype, elem_dtype):
    """Zero-pad hidden widths to lane multiples, cast weights to the matmul dtype and
    hidden-layer biases to the elementwise dtype, pre-transpose the final weight to
    (1, 128), and pull out the final bias as an f32 scalar (goes to SMEM)."""
    flat = []
    in_pad = params[0][0].shape[0]          # input features stay unpadded
    for idx, (w, b) in enumerate(params):
        fan_in, fan_out = w.shape
        out_pad = _PADDED_WIDTHS[idx]
        w_p = jnp.zeros((in_pad, out_pad), jnp.float32).at[:fan_in, :fan_out].set(w)
        b_p = jnp.zeros((1, out_pad), jnp.float32).at[:, :fan_out].set(
            jnp.asarray(b, jnp.float32).reshape(1, -1))
        if idx == len(params) - 1:
            flat.append(jnp.transpose(w_p).astype(matmul_dtype))   # (1, 128)
            flat.append(b_p.reshape(-1))                           # (1,) f32 -> SMEM
        else:
            flat.append(w_p.astype(matmul_dtype))
            flat.append(b_p.astype(elem_dtype))
        in_pad = out_pad
    return flat


def propensity_forward(x, params, *, batch_tile=None, use_bf16=True,
                       bf16_elementwise=None):
    """x: (B, D) float32.  params: list of 6 (W, b) with W (in, out), b (1, out).

    use_bf16=False runs the whole network in f32 (the exact PyTorch semantics);
    the default bf16 path keeps f32 MXU accumulation and an f32 final sigmoid."""
    B, D = x.shape
    if bf16_elementwise is None:
        bf16_elementwise = use_bf16 and _supports_bf16_elementwise()
    matmul_dt = jnp.bfloat16 if use_bf16 else jnp.float32
    elem_dt = jnp.bfloat16 if (use_bf16 and bf16_elementwise) else jnp.float32

    if batch_tile is None:
        # As large as possible (amortize the ~0.35us/step overhead), capped at 2048,
        # but keep >= 2 tiles once B exceeds a tile so both v7x TensorCores get work.
        half = pl.cdiv(B, 2)
        batch_tile = int(max(128, min(2048, 128 * pl.cdiv(half, 128))))
    assert batch_tile % 128 == 0, "batch_tile must be a lane multiple"

    num_tiles = pl.cdiv(B, batch_tile)
    Bp = num_tiles * batch_tile
    if Bp != B:
        x = jnp.pad(x, ((0, Bp - B), (0, 0)))

    flat = _prepare_params(params, matmul_dtype=matmul_dt, elem_dtype=elem_dt)

    # x tiled over batch; every weight/bias is a full-array block with a constant
    # block index (stays resident in VMEM); the final bias scalar lives in SMEM.
    # (pipeline_mode=pl.Buffered(1) on the constant blocks would drop ~0.4 MB of dead
    #  second buffers — omitted, VMEM headroom is ample at these sizes.)
    in_specs = [pl.BlockSpec((batch_tile, D), lambda i: (i, 0))]
    for arr in flat[:-1]:
        in_specs.append(pl.BlockSpec(arr.shape, lambda i: (0, 0)))
    in_specs.append(pl.BlockSpec(memory_space=pltpu.MemorySpace.SMEM))

    # Lane-dense output: one (1, batch_tile) row per grid step in a (1, Bp) array.
    out_spec = pl.BlockSpec((1, batch_tile), lambda i: (0, i))

    padded_dims = [(D, 256), (256, 256), (256, 256), (256, 128), (128, 128), (128, 1)]
    flops = 2 * Bp * sum(a * b for a, b in padded_dims)
    transcendentals = Bp * sum(o for _, o in padded_dims)     # exp / sigmoid per output
    weight_bytes = sum(int(a.size) * a.dtype.itemsize for a in flat)
    bytes_accessed = int(x.size) * x.dtype.itemsize + weight_bytes + Bp * 4

    # Only raise the scoped-VMEM limit if a (very large) tile would need it; cap at
    # 64 MiB so it stays within v7x's physical per-core VMEM.
    vmem_estimate = (2 * batch_tile * D * 4 + 2 * weight_bytes
                     + 6 * batch_tile * 256 * 4 + (2 << 20))
    compiler_kwargs = dict(dimension_semantics=("parallel",))
    if vmem_estimate > (32 << 20):
        compiler_kwargs["vmem_limit_bytes"] = int(min(vmem_estimate, 64 << 20))

    out_row = pl.pallas_call(
        _mlp_kernel,
        out_shape=jax.ShapeDtypeStruct((1, Bp), jnp.float32),
        grid_spec=pltpu.PrefetchScalarGridSpec(
            num_scalar_prefetch=0,
            grid=(num_tiles,),
            in_specs=in_specs,
            out_specs=out_spec,
        ),
        compiler_params=pltpu.CompilerParams(**compiler_kwargs),
        cost_estimate=pl.CostEstimate(
            flops=flops,
            transcendentals=transcendentals,
            bytes_accessed=bytes_accessed),
    )(x, *flat)

    return out_row.reshape(Bp, 1)[:B]


def init_params(key, input_dim):
    """Deterministic init mimicking PyTorch Linear default (uniform +-1/sqrt(fan_in))."""
    dims = [(input_dim, 200), (200, 200), (200, 200), (200, 100), (100, 100), (100, 1)]
    params = []
    for (fan_in, fan_out) in dims:
        key, kw, kb = jax.random.split(key, 3)
        bound = 1.0 / jnp.sqrt(jnp.float32(fan_in))
        w = jax.random.uniform(kw, (fan_in, fan_out), jnp.float32, -bound, bound)
        b = jax.random.uniform(kb, (1, fan_out), jnp.float32, -bound, bound)
        params.append((w, b))
    return params


def reference_forward(x, params, *, matmul_dtype=jnp.float32, elem_dtype=jnp.float32):
    """Pure-JAX reference.  Defaults reproduce the f32 PyTorch spec; pass
    matmul_dtype=bf16 (and elem_dtype matching the kernel) to mirror the kernel's
    bf16-activation / f32-accumulate path."""
    h = x.astype(matmul_dtype)
    out = None
    for i, (w, b) in enumerate(params):
        acc = jnp.dot(h, w.astype(matmul_dtype), preferred_element_type=jnp.float32)
        if i < len(params) - 1:
            z = acc.astype(elem_dtype) + b.astype(elem_dtype)
            if elem_dtype == jnp.float32:
                z = jnp.where(z > 0, z, jnp.expm1(z))
            else:
                z = jnp.where(z > 0, z, jnp.exp(z) - 1.0)   # kernel's bf16 ELU formula
            h = z.astype(matmul_dtype)
        else:
            out = jax.nn.sigmoid(acc + b.astype(jnp.float32))
    return out


if __name__ == "__main__":
    key = jax.random.PRNGKey(0)
    k_x, k_p = jax.random.split(key)

    B, D = 256, 16   # tabular propensity model: small feature dim, modest batch
    x = jax.random.normal(k_x, (B, D), dtype=jnp.float32)
    params = init_params(k_p, D)

    # Default (bf16) path — adaptive batch_tile gives two 128-row tiles here.
    out = jax.block_until_ready(propensity_forward(x, params))
    assert out.shape == (B, 1)
    assert bool(jnp.all((out >= 0.0) & (out <= 1.0))), "sigmoid output out of range"

    elem_dt = jnp.bfloat16 if _supports_bf16_elementwise() else jnp.float32
    ref_matched = reference_forward(x, params, matmul_dtype=jnp.bfloat16,
                                    elem_dtype=elem_dt)
    ref_f32 = reference_forward(x, params)   # f32 PyTorch-spec reference
    assert jnp.allclose(out, ref_matched, atol=2e-2), "mismatch vs dtype-matched reference"
    assert jnp.allclose(out, ref_f32, atol=5e-2), "mismatch vs f32 spec reference"

    # Full-precision path (PyTorch f32 semantics), kept available per the review.
    out_f32 = jax.block_until_ready(propensity_forward(x, params, use_bf16=False))
    assert jnp.allclose(out_f32, ref_f32, atol=2e-2), "f32-path mismatch vs spec reference"

    # Ragged batch exercises the pad/slice path (B not a multiple of the tile).
    out_small = jax.block_until_ready(propensity_forward(x[:10], params))
    assert out_small.shape == (10, 1)
    assert jnp.allclose(out_small, out[:10], atol=1e-5), "ragged-batch mismatch"

    print("KERNEL_OK")
</pallas_src>

<mosaic_0001>
module attributes {stable_mosaic.version = 11 : i64} {
  func.func @_mlp_kernel(%arg0: i32, %arg1: memref<128x16xf32, #tpu.memory_space<vmem>>, %arg2: memref<16x256xbf16, #tpu.memory_space<vmem>>, %arg3: memref<1x256xf32, #tpu.memory_space<vmem>>, %arg4: memref<256x256xbf16, #tpu.memory_space<vmem>>, %arg5: memref<1x256xf32, #tpu.memory_space<vmem>>, %arg6: memref<256x256xbf16, #tpu.memory_space<vmem>>, %arg7: memref<1x256xf32, #tpu.memory_space<vmem>>, %arg8: memref<256x128xbf16, #tpu.memory_space<vmem>>, %arg9: memref<1x128xf32, #tpu.memory_space<vmem>>, %arg10: memref<128x128xbf16, #tpu.memory_space<vmem>>, %arg11: memref<1x128xf32, #tpu.memory_space<vmem>>, %arg12: memref<1x128xbf16, #tpu.memory_space<vmem>>, %arg13: memref<1xf32, #tpu.memory_space<smem>>, %arg14: memref<1x128xf32, #tpu.memory_space<vmem>>) attributes {dimension_semantics = [#tpu.dimension_semantics<parallel>], iteration_bounds = array<i64: 2>, scalar_prefetch = 0 : i64, scratch_operands = 0 : i64, tpu.core_type = #tpu.core_type<tc>, window_params = [{transform_indices = @transform_0, window_bounds = array<i64: 128, 16>}, {pipeline_mode = #tpu.pipeline_mode<synchronous>, transform_indices = @transform_1, window_bounds = array<i64: 16, 256>}, {pipeline_mode = #tpu.pipeline_mode<synchronous>, transform_indices = @transform_2, window_bounds = array<i64: 1, 256>}, {pipeline_mode = #tpu.pipeline_mode<synchronous>, transform_indices = @transform_3, window_bounds = array<i64: 256, 256>}, {pipeline_mode = #tpu.pipeline_mode<synchronous>, transform_indices = @transform_4, window_bounds = array<i64: 1, 256>}, {pipeline_mode = #tpu.pipeline_mode<synchronous>, transform_indices = @transform_5, window_bounds = array<i64: 256, 256>}, {pipeline_mode = #tpu.pipeline_mode<synchronous>, transform_indices = @transform_6, window_bounds = array<i64: 1, 256>}, {pipeline_mode = #tpu.pipeline_mode<synchronous>, transform_indices = @transform_7, window_bounds = array<i64: 256, 128>}, {pipeline_mode = #tpu.pipeline_mode<synchronous>, transform_indices = @transform_8, window_bounds = array<i64: 1, 128>}, {pipeline_mode = #tpu.pipeline_mode<synchronous>, transform_indices = @transform_9, window_bounds = array<i64: 128, 128>}, {pipeline_mode = #tpu.pipeline_mode<synchronous>, transform_indices = @transform_10, window_bounds = array<i64: 1, 128>}, {pipeline_mode = #tpu.pipeline_mode<synchronous>, transform_indices = @transform_11, window_bounds = array<i64: 1, 128>}, {transform_indices = @transform_12, window_bounds = array<i64: 1>}, {transform_indices = @transform_13, window_bounds = array<i64: 1, 128>}]} {
    %c0 = arith.constant 0 : index
    %c0_0 = arith.constant 0 : index
    %0 = vector.load %arg1[%c0, %c0_0] : memref<128x16xf32, #tpu.memory_space<vmem>>, vector<128x16xf32>
    %1 = arith.truncf %0 : vector<128x16xf32> to vector<128x16xbf16>
    %c0_1 = arith.constant 0 : index
    %c0_2 = arith.constant 0 : index
    %2 = vector.load %arg2[%c0_1, %c0_2] : memref<16x256xbf16, #tpu.memory_space<vmem>>, vector<16x256xbf16>
    %cst = arith.constant dense<0.000000e+00> : vector<128x256xf32>
    %3 = tpu.matmul %1, %2, %cst {dimension_numbers = #tpu.dot_dimension_numbers<[1], [0], [0], [1], [0, 0, 1, 1], [], []>} : vector<128x16xbf16>, vector<16x256xbf16>, vector<128x256xf32> -> vector<128x256xf32>
    %c0_3 = arith.constant 0 : index
    %c0_4 = arith.constant 0 : index
    %4 = vector.load %arg3[%c0_3, %c0_4] : memref<1x256xf32, #tpu.memory_space<vmem>>, vector<1x256xf32>
    %5 = vector.broadcast %4 : vector<1x256xf32> to vector<128x256xf32>
    %6 = arith.addf %3, %5 : vector<128x256xf32>
    %cst_5 = arith.constant 0.000000e+00 : f32
    %7 = vector.broadcast %cst_5 : f32 to vector<128x256xf32>
    %8 = arith.cmpf ogt, %6, %7 : vector<128x256xf32>
    %9 = math.exp %6 : vector<128x256xf32>
    %cst_6 = arith.constant 1.000000e+00 : f32
    %10 = vector.broadcast %cst_6 : f32 to vector<128x256xf32>
    %11 = arith.subf %9, %10 : vector<128x256xf32>
    %12 = arith.select %8, %6, %11 : vector<128x256xi1>, vector<128x256xf32>
    %13 = arith.truncf %12 : vector<128x256xf32> to vector<128x256xbf16>
    %c0_7 = arith.constant 0 : index
    %c0_8 = arith.constant 0 : index
    %14 = vector.load %arg4[%c0_7, %c0_8] : memref<256x256xbf16, #tpu.memory_space<vmem>>, vector<256x256xbf16>
    %cst_9 = arith.constant dense<0.000000e+00> : vector<128x256xf32>
    %15 = tpu.matmul %13, %14, %cst_9 {dimension_numbers = #tpu.dot_dimension_numbers<[1], [0], [0], [1], [0, 0, 1, 1], [], []>} : vector<128x256xbf16>, vector<256x256xbf16>, vector<128x256xf32> -> vector<128x256xf32>
    %c0_10 = arith.constant 0 : index
    %c0_11 = arith.constant 0 : index
    %16 = vector.load %arg5[%c0_10, %c0_11] : memref<1x256xf32, #tpu.memory_space<vmem>>, vector<1x256xf32>
    %17 = vector.broadcast %16 : vector<1x256xf32> to vector<128x256xf32>
    %18 = arith.addf %15, %17 : vector<128x256xf32>
    %cst_12 = arith.constant 0.000000e+00 : f32
    %19 = vector.broadcast %cst_12 : f32 to vector<128x256xf32>
    %20 = arith.cmpf ogt, %18, %19 : vector<128x256xf32>
    %21 = math.exp %18 : vector<128x256xf32>
    %cst_13 = arith.constant 1.000000e+00 : f32
    %22 = vector.broadcast %cst_13 : f32 to vector<128x256xf32>
    %23 = arith.subf %21, %22 : vector<128x256xf32>
    %24 = arith.select %20, %18, %23 : vector<128x256xi1>, vector<128x256xf32>
    %25 = arith.truncf %24 : vector<128x256xf32> to vector<128x256xbf16>
    %c0_14 = arith.constant 0 : index
    %c0_15 = arith.constant 0 : index
    %26 = vector.load %arg6[%c0_14, %c0_15] : memref<256x256xbf16, #tpu.memory_space<vmem>>, vector<256x256xbf16>
    %cst_16 = arith.constant dense<0.000000e+00> : vector<128x256xf32>
    %27 = tpu.matmul %25, %26, %cst_16 {dimension_numbers = #tpu.dot_dimension_numbers<[1], [0], [0], [1], [0, 0, 1, 1], [], []>} : vector<128x256xbf16>, vector<256x256xbf16>, vector<128x256xf32> -> vector<128x256xf32>
    %c0_17 = arith.constant 0 : index
    %c0_18 = arith.constant 0 : index
    %28 = vector.load %arg7[%c0_17, %c0_18] : memref<1x256xf32, #tpu.memory_space<vmem>>, vector<1x256xf32>
    %29 = vector.broadcast %28 : vector<1x256xf32> to vector<128x256xf32>
    %30 = arith.addf %27, %29 : vector<128x256xf32>
    %cst_19 = arith.constant 0.000000e+00 : f32
    %31 = vector.broadcast %cst_19 : f32 to vector<128x256xf32>
    %32 = arith.cmpf ogt, %30, %31 : vector<128x256xf32>
    %33 = math.exp %30 : vector<128x256xf32>
    %cst_20 = arith.constant 1.000000e+00 : f32
    %34 = vector.broadcast %cst_20 : f32 to vector<128x256xf32>
    %35 = arith.subf %33, %34 : vector<128x256xf32>
    %36 = arith.select %32, %30, %35 : vector<128x256xi1>, vector<128x256xf32>
    %37 = arith.truncf %36 : vector<128x256xf32> to vector<128x256xbf16>
    %c0_21 = arith.constant 0 : index
    %c0_22 = arith.constant 0 : index
    %38 = vector.load %arg8[%c0_21, %c0_22] : memref<256x128xbf16, #tpu.memory_space<vmem>>, vector<256x128xbf16>
    %cst_23 = arith.constant dense<0.000000e+00> : vector<128x128xf32>
    %39 = tpu.matmul %37, %38, %cst_23 {dimension_numbers = #tpu.dot_dimension_numbers<[1], [0], [0], [1], [0, 0, 1, 1], [], []>} : vector<128x256xbf16>, vector<256x128xbf16>, vector<128x128xf32> -> vector<128x128xf32>
    %c0_24 = arith.constant 0 : index
    %c0_25 = arith.constant 0 : index
    %40 = vector.load %arg9[%c0_24, %c0_25] : memref<1x128xf32, #tpu.memory_space<vmem>>, vector<1x128xf32>
    %41 = vector.broadcast %40 : vector<1x128xf32> to vector<128x128xf32>
    %42 = arith.addf %39, %41 : vector<128x128xf32>
    %cst_26 = arith.constant 0.000000e+00 : f32
    %43 = vector.broadcast %cst_26 : f32 to vector<128x128xf32>
    %44 = arith.cmpf ogt, %42, %43 : vector<128x128xf32>
    %45 = math.exp %42 : vector<128x128xf32>
    %cst_27 = arith.constant 1.000000e+00 : f32
    %46 = vector.broadcast %cst_27 : f32 to vector<128x128xf32>
    %47 = arith.subf %45, %46 : vector<128x128xf32>
    %48 = arith.select %44, %42, %47 : vector<128x128xi1>, vector<128x128xf32>
    %49 = arith.truncf %48 : vector<128x128xf32> to vector<128x128xbf16>
    %c0_28 = arith.constant 0 : index
    %c0_29 = arith.constant 0 : index
    %50 = vector.load %arg10[%c0_28, %c0_29] : memref<128x128xbf16, #tpu.memory_space<vmem>>, vector<128x128xbf16>
    %cst_30 = arith.constant dense<0.000000e+00> : vector<128x128xf32>
    %51 = tpu.matmul %49, %50, %cst_30 {dimension_numbers = #tpu.dot_dimension_numbers<[1], [0], [0], [1], [0, 0, 1, 1], [], []>} : vector<128x128xbf16>, vector<128x128xbf16>, vector<128x128xf32> -> vector<128x128xf32>
    %c0_31 = arith.constant 0 : index
    %c0_32 = arith.constant 0 : index
    %52 = vector.load %arg11[%c0_31, %c0_32] : memref<1x128xf32, #tpu.memory_space<vmem>>, vector<1x128xf32>
    %53 = vector.broadcast %52 : vector<1x128xf32> to vector<128x128xf32>
    %54 = arith.addf %51, %53 : vector<128x128xf32>
    %cst_33 = arith.constant 0.000000e+00 : f32
    %55 = vector.broadcast %cst_33 : f32 to vector<128x128xf32>
    %56 = arith.cmpf ogt, %54, %55 : vector<128x128xf32>
    %57 = math.exp %54 : vector<128x128xf32>
    %cst_34 = arith.constant 1.000000e+00 : f32
    %58 = vector.broadcast %cst_34 : f32 to vector<128x128xf32>
    %59 = arith.subf %57, %58 : vector<128x128xf32>
    %60 = arith.select %56, %54, %59 : vector<128x128xi1>, vector<128x128xf32>
    %61 = arith.truncf %60 : vector<128x128xf32> to vector<128x128xbf16>
    %62 = tpu.transpose %61, [1, 0] : vector<128x128xbf16> -> vector<128x128xbf16>
    %c0_35 = arith.constant 0 : index
    %c0_36 = arith.constant 0 : index
    %63 = vector.load %arg12[%c0_35, %c0_36] : memref<1x128xbf16, #tpu.memory_space<vmem>>, vector<1x128xbf16>
    %cst_37 = arith.constant dense<0.000000e+00> : vector<1x128xf32>
    %64 = tpu.matmul %63, %62, %cst_37 {dimension_numbers = #tpu.dot_dimension_numbers<[1], [0], [0], [1], [0, 0, 1, 1], [], []>} : vector<1x128xbf16>, vector<128x128xbf16>, vector<1x128xf32> -> vector<1x128xf32>
    %c0_38 = arith.constant 0 : index
    %65 = memref.load %arg13[%c0_38] : memref<1xf32, #tpu.memory_space<smem>>
    %66 = vector.broadcast %65 : f32 to vector<1x128xf32>
    %67 = arith.addf %64, %66 : vector<1x128xf32>
    %68 = arith.negf %67 : vector<1x128xf32>
    %69 = math.exp %68 : vector<1x128xf32>
    %cst_39 = arith.constant 1.000000e+00 : f32
    %70 = vector.broadcast %cst_39 : f32 to vector<1x128xf32>
    %71 = arith.addf %70, %69 : vector<1x128xf32>
    %72 = arith.divf %70, %71 : vector<1x128xf32>
    %c0_40 = arith.constant 0 : index
    %c0_41 = arith.constant 0 : index
    %73 = vector.load %arg14[%c0_40, %c0_41] : memref<1x128xf32, #tpu.memory_space<vmem>>, vector<1x128xf32>
    tpu.vector_store %arg14[%c0_40, %c0_41], %72 {strides = array<i32>} : memref<1x128xf32, #tpu.memory_space<vmem>>, vector<1x128xf32>,
    return
  }
  func.func @transform_0(%arg0: i32) -> (i32, i32) {
    %c0_i32 = arith.constant 0 : i32
    %c0_i32_0 = arith.constant 0 : i32
    return %arg0, %c0_i32 : i32, i32
  }
  func.func @transform_1(%arg0: i32) -> (i32, i32) {
    %c0_i32 = arith.constant 0 : i32
    %c0_i32_0 = arith.constant 0 : i32
    %c0_i32_1 = arith.constant 0 : i32
    return %c0_i32, %c0_i32_0 : i32, i32
  }
  func.func @transform_2(%arg0: i32) -> (i32, i32) {
    %c0_i32 = arith.constant 0 : i32
    %c0_i32_0 = arith.constant 0 : i32
    %c0_i32_1 = arith.constant 0 : i32
    return %c0_i32, %c0_i32_0 : i32, i32
  }
  func.func @transform_3(%arg0: i32) -> (i32, i32) {
    %c0_i32 = arith.constant 0 : i32
    %c0_i32_0 = arith.constant 0 : i32
    %c0_i32_1 = arith.constant 0 : i32
    return %c0_i32, %c0_i32_0 : i32, i32
  }
  func.func @transform_4(%arg0: i32) -> (i32, i32) {
    %c0_i32 = arith.constant 0 : i32
    %c0_i32_0 = arith.constant 0 : i32
    %c0_i32_1 = arith.constant 0 : i32
    return %c0_i32, %c0_i32_0 : i32, i32
  }
  func.func @transform_5(%arg0: i32) -> (i32, i32) {
    %c0_i32 = arith.constant 0 : i32
    %c0_i32_0 = arith.constant 0 : i32
    %c0_i32_1 = arith.constant 0 : i32
    return %c0_i32, %c0_i32_0 : i32, i32
  }
  func.func @transform_6(%arg0: i32) -> (i32, i32) {
    %c0_i32 = arith.constant 0 : i32
    %c0_i32_0 = arith.constant 0 : i32
    %c0_i32_1 = arith.constant 0 : i32
    return %c0_i32, %c0_i32_0 : i32, i32
  }
  func.func @transform_7(%arg0: i32) -> (i32, i32) {
    %c0_i32 = arith.constant 0 : i32
    %c0_i32_0 = arith.constant 0 : i32
    %c0_i32_1 = arith.constant 0 : i32
    return %c0_i32, %c0_i32_0 : i32, i32
  }
  func.func @transform_8(%arg0: i32) -> (i32, i32) {
    %c0_i32 = arith.constant 0 : i32
    %c0_i32_0 = arith.constant 0 : i32
    %c0_i32_1 = arith.constant 0 : i32
    return %c0_i32, %c0_i32_0 : i32, i32
  }
  func.func @transform_9(%arg0: i32) -> (i32, i32) {
    %c0_i32 = arith.constant 0 : i32
    %c0_i32_0 = arith.constant 0 : i32
    %c0_i32_1 = arith.constant 0 : i32
    return %c0_i32, %c0_i32_0 : i32, i32
  }
  func.func @transform_10(%arg0: i32) -> (i32, i32) {
    %c0_i32 = arith.constant 0 : i32
    %c0_i32_0 = arith.constant 0 : i32
    %c0_i32_1 = arith.constant 0 : i32
    return %c0_i32, %c0_i32_0 : i32, i32
  }
  func.func @transform_11(%arg0: i32) -> (i32, i32) {
    %c0_i32 = arith.constant 0 : i32
    %c0_i32_0 = arith.constant 0 : i32
    %c0_i32_1 = arith.constant 0 : i32
    return %c0_i32, %c0_i32_0 : i32, i32
  }
  func.func @transform_12(%arg0: i32) -> i32 {
    %c0_i32 = arith.constant 0 : i32
    %c0_i32_0 = arith.constant 0 : i32
    return %c0_i32 : i32
  }
  func.func @transform_13(%arg0: i32) -> (i32, i32) {
    %c0_i32 = arith.constant 0 : i32
    %c0_i32_0 = arith.constant 0 : i32
    return %c0_i32, %arg0 : i32, i32
  }
}

</mosaic_0001>

<bundles_post_ra>
// kernel: tpu_custom_call.1
= control target key start
LH: loop header
LB: loop body
LE: loop exit
PB: predicated region body
PF: predicated region fallthrough
CT: control target
= control target key end

     0   :  { %s4844_s0 = inlined_call_operand.vmem [shape: f32[256,16], index: 0, kind: input, shape index: {}]   ;;  %s4845_s1 = inlined_call_operand.hbm [shape: bf16[16,256], index: 1, kind: input, shape index: {}]   ;;  %s4846_s2 = inlined_call_operand.vmem [shape: f32[1,256], index: 2, kind: input, shape index: {}]   ;;  %s4847_s3 = inlined_call_operand.vmem [shape: bf16[256,256], index: 3, kind: input, shape index: {}]   ;;  %s4848_s4 = inlined_call_operand.hbm [shape: f32[1,256], index: 4, kind: input, shape index: {}]   ;;  %s4849_s5 = inlined_call_operand.hbm [shape: bf16[256,256], index: 5, kind: input, shape index: {}]   ;;  %s4850_s6 = inlined_call_operand.hbm [shape: f32[1,256], index: 6, kind: input, shape index: {}]   ;;  %s4851_s7 = inlined_call_operand.hbm [shape: bf16[256,128], index: 7, kind: input, shape index: {}]   ;;  %s4852_s8 = inlined_call_operand.hbm [shape: f32[1,128], index: 8, kind: input, shape index: {}]   ;;  %s4853_s9 = inlined_call_operand.vmem [shape: bf16[128,128], index: 9, kind: input, shape index: {}]   ;;  %s4854_s10 = inlined_call_operand.vmem [shape: f32[1,128], index: 10, kind: input, shape index: {}]   ;;  %s4855_s11 = inlined_call_operand.vmem [shape: bf16[1,128], index: 11, kind: input, shape index: {}]   ;;  %s4856_s12 = inlined_call_operand.<no memory space> [shape: f32[1], index: 12, kind: input, shape index: {}]   ;;  %s4857_s13 = inlined_call_operand.hbm [shape: f32[1,256], index: 13, kind: output, shape index: {}]  }
   0x1   :  { %4870 = sst [smem:[#allocation27_spill]] %s4848_s4 }
   0x2   :  { %4871 = sst [smem:[#allocation28_spill]] %s4850_s6 }
   0x3   :  { %4872 = sst [smem:[#allocation29_spill]] %s4857_s13 }
   0x4   :  { %18 = sst [smem:[#allocation2]] %s4856_s12 }
   0x5   :  { %19 = vsyncpa [#allocation4], 0 }
   0x6   :  { %20 = vsyncpa [#allocation7], 0 }
   0x7   :  { %21 = vsyncpa [#allocation10], 0 }
   0x8   :  { %22 = vsyncpa [#allocation13], 0 }
   0x9   :  { %23 = vsyncpa [#allocation5], 0 }
   0xa   :  { %25 = vsyncpa [#allocation5 + $0x1], 0  ;;  %s3842_s27 = smov 0   ;;  %s3844_s28 = smov 0  }
   0xb   :  { %s3846_s29 = smov 0   ;;  %s3848_s30 = smov 0  }
   0xc LB: > { %4873 = sst [smem:[#allocation20_spill]] %s3741_s27  ;;  %s3863_s12 = sadd.s32 4294967295, %s3753_s30   ;;  %s3753_s30 = sphi %s3848_s30, %s4903_s30   ;;  %s3749_s29 = sphi %s3846_s29, %s4905_s29   ;;  %s3745_s28 = sphi %s3844_s28, %s4907_s28   ;;  %s3741_s27 = sphi %s3842_s27, %s4906_s27  }
   0xd   : > { %4874 = sst [smem:[#allocation21_spill]] %s3749_s29  ;;  %s2626_s14 = sadd.s32 4294967294, %s3753_s30  }
   0xe   : > { %4875 = sst [smem:[#allocation22_spill]] %s3753_s30  ;;  %s3867_s15 = sadd.s32 1, %s3753_s30  }
   0xf   : > { %4876 = sst [smem:[#allocation23_spill]] %s3867_s15  ;;  %s316_s16 = sadd.s32 1, %s3749_s29 }
  0x10   : > { %s313_s17 = ssub.s32 %s3753_s30, %s3867_s15  ;;  %p326_p0 = scmp.ne.s32.totalorder %s3749_s29, %s3745_s28 }
  0x11   : > { %p314_p1 = scmp.eq.s32.totalorder %s313_s17, 0  ;;  %p327_p2 = scmp.eq.s32.totalorder %s3863_s12, 1 }
  0x12   : > { %p332_p3 = scmp.ne.s32.totalorder %s3745_s28, %s3741_s27  ;;  %p333_p4 = scmp.eq.s32.totalorder %s2626_s14, 1 }
  0x13   : > { %s3878_s18 = scalar_select %p314_p1, %s3749_s29, %s316_s16  }
  0x14   : > { %p3880_p5 = por %p327_p2, %p326_p0  ;;  %p3884_p6 = por %p333_p4, %p332_p3 }
  0x15   : > { %4877 = sst [smem:[#allocation24_spill]] %s3878_s18  ;;  %p2627_p7 = scmp.ge.s32.totalorder %s3753_s30, 1 }
  0x16   : > { %s4878_s19 = scalar_select %p3880_p5, 1, 0 }
  0x17   : > { %s4880_s20 = scalar_select %p3884_p6, 1, 0 }
  0x18   : > { %4879 = sst [smem:[#allocation25_spill]] %s4878_s19  ;;  %p340_p8 = scmp.lt.s32.totalorder %s3753_s30, 3 }
  0x19   : > { %4881 = sst [smem:[#allocation26_spill]] %s4880_s20  ;;  %p4862_p9 = scmp.eq.s32.totalorder %s3863_s12, 0 }
  0x1a   : > { %p3891_p10 = pnand %p2627_p7, %p340_p8  ;;  %s3755_s22 = smov [#allocation6]  }
  0x1b   : > { %s372_s23 = sshll.u32 %s3755_s22, 4  ;;  %s3756_s24 = smov [#allocation9]   ;;  %s373_s23 = int_to_ptr.vmem [resolvable:$true] %s372_s23 }
  0x1c   : > { %s4882_s21 = scalar_select %p3891_p10, 1, 0 }
  0x1d   : > { %p3043_p11 = pneg %p3891_p10  ;;  %s396_s25 = sshll.u32 %s3756_s24, 4  ;;  %s3903_s25 = int_to_ptr.vmem [resolvable:$true] %s396_s25 }
  0x1e   : > { %s3757_s14 = smov [#allocation3]   ;;  %s4884_s4 = sld [smem:[#allocation27_spill]] }
  0x1f   : > { %p3899_p12 = pnand %p4862_p9, %p3043_p11  ;;  %s352_s16 = sshll.u32 %s3757_s14, 4  ;;  %s3905_s16 = int_to_ptr.vmem [resolvable:$true] %s352_s16 }
  0x21   : > { %p3915_p0 = pneg %p3899_p12 }
  0x24   : > { %s3507_s22 = scalar_lea.hbm %s4884_s4, 32 }
  0x25   : > { %p3508_p13 = scmp.ne.s32.totalorder %s4884_s4, %s3507_s22  ;;  %p3514_p3 = scmp.lt.u32.totalorder %s3507_s22, %s4884_s4 }
  0x27   : > { %p3510_p1 = pnand %p3915_p0, %p3508_p13 }
  0x29   : > { %p3511_p2 = pneg %p3510_p1 }
  0x2b   : > { %p3516_p4 = pnand %p3514_p3, %p3511_p2 }
  0x2d   : > { %3519 = shalt.err (!%p3516_p4)
}
  0x2e   : > { %s3520_s18 = scalar_lea.vmem %s373_s23, 32  ;;  %p3528_p9 = scmp.lt.s32.totalorder %s373_s23, %s373_s23 }
  0x2f   : > { %p3521_p7 = scmp.ne.s32.totalorder %s373_s23, %s3520_s18  ;;  %p3529_p6 = scmp.lt.s32.totalorder %s3520_s18, %s3520_s18 }
  0x31   : > { %p3523_p8 = pnand %p3521_p7, %p3915_p0  ;;  %p3530_p5 = por %p3529_p6, %p3528_p9 }
  0x33   : > { %p3524_p11 = pneg %p3523_p8 }
  0x35   : > { %p3531_p10 = pnand %p3530_p5, %p3524_p11 }
  0x37   : > { %3534 = shalt.err (!%p3531_p10)
}
  0x38   : > { %3049 = dma.hbm_to_vmem [thread:$0]  (!%p3899_p12), %s4884_s4, 32, %s373_s23, [#allocation7]  }
  0x39   : > { %s4886_s6 = sld [smem:[#allocation28_spill]] }
  0x3f   : > { %s3535_s22 = scalar_lea.hbm %s4886_s6, 32 }
  0x40   : > { %p3536_p13 = scmp.ne.s32.totalorder %s4886_s6, %s3535_s22  ;;  %p3542_p5 = scmp.lt.u32.totalorder %s3535_s22, %s4886_s6 }
  0x42   : > { %p3538_p1 = pnand %p3536_p13, %p3915_p0 }
  0x44   : > { %p3539_p6 = pneg %p3538_p1 }
  0x46   : > { %p3544_p9 = pnand %p3542_p5, %p3539_p6 }
  0x48   : > { %3547 = shalt.err (!%p3544_p9)
}
  0x49   : > { %s3548_s23 = scalar_lea.vmem %s3903_s25, 32  ;;  %p3556_p4 = scmp.lt.s32.totalorder %s3903_s25, %s3903_s25 }
  0x4a   : > { %p3549_p10 = scmp.ne.s32.totalorder %s3903_s25, %s3548_s23  ;;  %p3557_p7 = scmp.lt.s32.totalorder %s3548_s23, %s3548_s23 }
  0x4c   : > { %p3551_p2 = pnand %p3549_p10, %p3915_p0  ;;  %p3558_p8 = por %p3557_p7, %p3556_p4 }
  0x4e   : > { %p3552_p3 = pneg %p3551_p2 }
  0x50   : > { %p3559_p11 = pnand %p3558_p8, %p3552_p3 }
  0x52   : > { %3562 = shalt.err (!%p3559_p11)
}
  0x53   : > { %3055 = dma.hbm_to_vmem [thread:$0]  (!%p3899_p12), %s4886_s6, 32, %s3903_s25, [#allocation10]  }
  0x54   : > { %s3563_s20 = scalar_lea.hbm %s4845_s1, 256 }
  0x55   : > { %p3564_p13 = scmp.ne.s32.totalorder %s4845_s1, %s3563_s20  ;;  %p3570_p5 = scmp.lt.u32.totalorder %s3563_s20, %s4845_s1 }
  0x57   : > { %p3566_p1 = pnand %p3564_p13, %p3915_p0 }
  0x59   : > { %p3567_p6 = pneg %p3566_p1 }
  0x5b   : > { %p3572_p9 = pnand %p3570_p5, %p3567_p6 }
  0x5d   : > { %3575 = shalt.err (!%p3572_p9)
}
  0x5e   : > { %s3576_s25 = scalar_lea.vmem %s3905_s16, 256  ;;  %p3584_p4 = scmp.lt.s32.totalorder %s3905_s16, %s3905_s16 }
  0x5f   : > { %p3577_p10 = scmp.ne.s32.totalorder %s3905_s16, %s3576_s25  ;;  %p3585_p7 = scmp.lt.s32.totalorder %s3576_s25, %s3576_s25 }
  0x61   : > { %p3579_p2 = pnand %p3577_p10, %p3915_p0  ;;  %p3586_p8 = por %p3585_p7, %p3584_p4 }
  0x63   : > { %p3580_p3 = pneg %p3579_p2 }
  0x65   : > { %p3587_p11 = pnand %p3586_p8, %p3580_p3 }
  0x67   : > { %3590 = shalt.err (!%p3587_p11)
}
  0x68   : > { %s3758_s23 = smov 128   ;;  %s3759_s27 = smov 8  }
  0x69   : > { %3046 = dma.hbm_to_vmem [thread:$0]  (!%p3899_p12), %s4845_s1, 256, %s3905_s16, [#allocation4], %s3758_s23, %s3758_s23, %s3759_s27  }
  0x6a   : > { %s3760_s15 = smov [#allocation8]   ;;  %s3761_s17 = smov [#allocation11]  }
  0x6b   : > { %s382_s20 = sshll.u32 %s3760_s15, 4  ;;  %s406_s22 = sshll.u32 %s3761_s17, 4  ;;  %s383_s20 = int_to_ptr.vmem [resolvable:$true] %s382_s20  ;;  %s407_s22 = int_to_ptr.vmem [resolvable:$true] %s406_s22 }
  0x6c   : > { %s3591_s25 = scalar_lea.hbm %s4849_s5, 4096 }
  0x6d   : > { %p3592_p13 = scmp.ne.s32.totalorder %s4849_s5, %s3591_s25  ;;  %p3598_p5 = scmp.lt.u32.totalorder %s3591_s25, %s4849_s5 }
  0x6f   : > { %p3594_p1 = pnand %p3592_p13, %p3915_p0 }
  0x71   : > { %p3595_p6 = pneg %p3594_p1 }
  0x73   : > { %p3600_p9 = pnand %p3598_p5, %p3595_p6 }
  0x75   : > { %3603 = shalt.err (!%p3600_p9)
}
  0x76   : > { %s3604_s16 = scalar_lea.vmem %s383_s20, 4096  ;;  %p3612_p4 = scmp.lt.s32.totalorder %s383_s20, %s383_s20 }
  0x77   : > { %p3605_p10 = scmp.ne.s32.totalorder %s383_s20, %s3604_s16  ;;  %p3613_p7 = scmp.lt.s32.totalorder %s3604_s16, %s3604_s16 }
  0x79   : > { %p3607_p2 = pnand %p3605_p10, %p3915_p0  ;;  %p3614_p8 = por %p3613_p7, %p3612_p4 }
  0x7b   : > { %p3608_p3 = pneg %p3607_p2 }
  0x7d   : > { %p3615_p11 = pnand %p3614_p8, %p3608_p3 }
  0x7f   : > { %3618 = shalt.err (!%p3615_p11)
}
  0x80   : > { %3052 = dma.hbm_to_vmem [thread:$0]  (!%p3899_p12), %s4849_s5, 4096, %s383_s20, [#allocation7], %s3758_s23, %s3758_s23, %s3759_s27  }
  0x81   : > { %s3619_s30 = scalar_lea.hbm %s4851_s7, 2048 }
  0x82   : > { %p3620_p13 = scmp.ne.s32.totalorder %s4851_s7, %s3619_s30  ;;  %p3626_p5 = scmp.lt.u32.totalorder %s3619_s30, %s4851_s7 }
  0x84   : > { %p3622_p1 = pnand %p3620_p13, %p3915_p0 }
  0x86   : > { %p3623_p6 = pneg %p3622_p1 }
  0x88   : > { %p3628_p9 = pnand %p3626_p5, %p3623_p6 }
  0x8a   : > { %3631 = shalt.err (!%p3628_p9)
}
  0x8b   : > { %s3632_s18 = scalar_lea.vmem %s407_s22, 2048  ;;  %p3640_p4 = scmp.lt.s32.totalorder %s407_s22, %s407_s22 }
  0x8c   : > { %p3633_p10 = scmp.ne.s32.totalorder %s407_s22, %s3632_s18  ;;  %p3641_p7 = scmp.lt.s32.totalorder %s3632_s18, %s3632_s18 }
  0x8e   : > { %p3635_p2 = pnand %p3633_p10, %p3915_p0  ;;  %p3642_p8 = por %p3641_p7, %p3640_p4 }
  0x90   : > { %p3636_p3 = pneg %p3635_p2 }
  0x92   : > { %p3643_p11 = pnand %p3642_p8, %p3636_p3 }
  0x94   : > { %3646 = shalt.err (!%p3643_p11)
}
  0x95   : > { %s3762_s23 = smov 64   ;;  %s3763_s27 = smov 4  }
  0x96   : > { %3058 = dma.hbm_to_vmem [thread:$0]  (!%p3899_p12), %s4851_s7, 2048, %s407_s22, [#allocation10], %s3762_s23, %s3762_s23, %s3763_s27  }
  0x97   : > { %s3764_s16 = smov [#allocation12]   ;;  %s3647_s19 = scalar_lea.hbm %s4852_s8, 16 }
  0x98   : > { %s420_s4 = sshll.u32 %s3764_s16, 4  ;;  %p3648_p13 = scmp.ne.s32.totalorder %s4852_s8, %s3647_s19  ;;  %s421_s4 = int_to_ptr.vmem [resolvable:$true] %s420_s4 }
  0x99   : > { %p3654_p5 = scmp.lt.u32.totalorder %s3647_s19, %s4852_s8 }
  0x9a   : > { %p3650_p1 = pnand %p3648_p13, %p3915_p0 }
  0x9c   : > { %p3651_p6 = pneg %p3650_p1 }
  0x9e   : > { %p3656_p9 = pnand %p3654_p5, %p3651_p6 }
  0xa0   : > { %3659 = shalt.err (!%p3656_p9)
}
  0xa1   : > { %s3660_s22 = scalar_lea.vmem %s421_s4, 16  ;;  %s3667_s14 = scalar_lea.vmem %s421_s4, 32 }
  0xa2   : > { %p3661_p10 = scmp.ne.s32.totalorder %s421_s4, %s3660_s22  ;;  %p3668_p4 = scmp.lt.s32.totalorder %s421_s4, %s421_s4 }
  0xa3   : > { %p3669_p7 = scmp.lt.s32.totalorder %s3667_s14, %s3660_s22 }
  0xa4   : > { %p3663_p2 = pnand %p3661_p10, %p3915_p0 }
  0xa5   : > { %p3670_p8 = por %p3669_p7, %p3668_p4 }
  0xa6   : > { %p3664_p3 = pneg %p3663_p2 }
  0xa8   : > { %p3671_p11 = pnand %p3670_p8, %p3664_p3 }
  0xaa   : > { %3674 = shalt.err (!%p3671_p11)
}
  0xab   : > { %3061 = dma.hbm_to_vmem [thread:$0]  (!%p3899_p12), %s4852_s8, 16, %s421_s4, [#allocation13]  }
  0xac   : > { %p4887_p13 = scmp.ne.s32.totalorder %s4882_s21, 0 }
  0xad   : > { %p4888_p1 = scmp.eq.s32.totalorder (!%p4887_p13), %s3863_s12, 0 }
  0xae   : > { %454 = sbr.rel (%p4887_p13) target bundleno = 1707 (0x6ab), region = 72 }
  0xb5   : > { %3720 = dma.done.wait (%p4888_p1), [#allocation4], 256   ;;  %p4889_p0 = pmov %p4888_p1 }
  0xb7   : > { %3722 = vsyncadd (%p4889_p0), [#allocation4], 4294967040  ;;  %p4890_p6 = pmov %p4889_p0 }
  0xb8   : > { %p4891_p5 = pmov %p4889_p0 }
  0xb9   : > { %3724 = dma.done.wait (%p4890_p6), [#allocation7], 4128  }
  0xba   : > { %3726 = vsyncadd (%p4891_p5), [#allocation7], 4294963168  ;;  %p4892_p9 = pmov %p4889_p0 }
  0xbb   : > { %p4893_p12 = pmov %p4889_p0 }
  0xbc   : > { %3728 = dma.done.wait (%p4892_p9), [#allocation10], 2080  }
  0xbd   : > { %3730 = vsyncadd (%p4893_p12), [#allocation10], 4294965216  ;;  %p4894_p10 = pmov %p4889_p0 }
  0xbe   : > { %p4895_p2 = pmov %p4889_p0 }
  0xbf   : > { %3732 = dma.done.wait (%p4894_p10), [#allocation13], 16  }
  0xc0   : > { %3734 = vsyncadd (%p4895_p2), [#allocation13], 4294967280  ;;  %s4050_s21 = sshll.u32 %s3863_s12, 4  ;;  %v3765_v0 = vmov 0   ;;  %v3124_v1 = vld [vmem:[#allocation3 + $0x4] ss:$8 sps:$4 sm:$0xff]  }
  0xc1   : > { %629 = vmatprep.mubr.bf16.mxu0 %v3765_v0  ;;  %p518_p3 = scmp.lt.s32.totalorder %s4050_s21, 31  ;;  %v3126_v2 = vld [vmem:[#allocation3] ss:$8 sps:$4 sm:$0xff]   ;;  %597 = vmatprep.subr.bf16.mxu0 %v3124_v1  ;;  %vm572_vm0 = vcmask 130048   ;;  %v3127_v8 = vld [vmem:[%s4847_s3 + $0x4] ss:$8 sps:$4 sm:$0xff]  }
  0xc2   : > { %598 = vmatpush1.bf16.msra.mxu0 %v3126_v2  ;;  %v3129_v9 = vld [vmem:[%s4847_s3] ss:$8 sps:$4 sm:$0xff]   ;;  %v3130_v10 = vld [vmem:[%s4847_s3 + $0x14] ss:$8 sps:$4 sm:$0xff]   ;;  %1090 = vmatprep.subr.bf16.mxu1 %v3127_v8  ;;  %v3132_v12 = vld [vmem:[%s4847_s3 + $0x10] ss:$8 sps:$4 sm:$0xff]  }
  0xc3   : > { %s519_s26 = scalar_select %p518_p3, %s4050_s21, 31  ;;  %1091 = vmatpush1.bf16.msra.mxu1 %v3129_v9  ;;  %v3133_v13 = vld [vmem:[%s4847_s3 + $0x24] ss:$8 sps:$4 sm:$0xff]   ;;  %v3135_v15 = vld [vmem:[%s4847_s3 + $0x20] ss:$8 sps:$4 sm:$0xff]  }
  0xc4   : > { %1092 = vmatprep.subr.bf16.mxu1 %v3130_v10  ;;  %v3136_v17 = vld [vmem:[%s4847_s3 + $0x34] ss:$8 sps:$4 sm:$0xff]   ;;  %v3138_v19 = vld [vmem:[%s4847_s3 + $0x30] ss:$8 sps:$4 sm:$0xff]   ;;  %v3139_v20 = vld [vmem:[%s4847_s3 + $0x44] ss:$8 sps:$4 sm:$0xff]  }
  0xc5   : > { %s2643_s24 = sshll.u32 %s519_s26, 3  ;;  %v3141_v21 = vld [vmem:[%s4847_s3 + $0x40] ss:$8 sps:$4 sm:$0xff]   ;;  %v3142_v24 = vld [vmem:[%s4847_s3 + $0x54] ss:$8 sps:$4 sm:$0xff]   ;;  %s4896_s18 = sld [smem:[#allocation25_spill]] }
  0xc6   : > { %s4058_s25 = scalar_lea.vmem %s4844_s0, %s2643_s24  ;;  %v3144_v25 = vld [vmem:[%s4847_s3 + $0x50] ss:$8 sps:$4 sm:$0xff]   ;;  %v3145_v26 = vld [vmem:[%s4847_s3 + $0x64] ss:$8 sps:$4 sm:$0xff]   ;;  %v3147_v28 = vld [vmem:[%s4847_s3 + $0x60] ss:$8 sps:$4 sm:$0xff]  }
  0xc7   : > { %v524_v3 = vld [vmem:[%s4058_s25] sm:$0xff]  ;;  %v525_v4 = vld [vmem:[%s4058_s25 + $0x8] sm:$0xff]  ;;  %v526_v6 = vld [vmem:[%s4058_s25 + $0x10] sm:$0xff]  ;;  %1093 = vmatpush1.bf16.msra.mxu1 %v3132_v12  ;;  %v552_v12 = vlaneseq  ;;  %s515_s23 = sand.u32 1, %s3745_s28   ;;  %s4897_s12 = sld [smem:[#allocation29_spill]] }
  0xc8   : > { %v540_v5 = vpack.c.bf16 %v525_v4, %v524_v3  ;;  %v527_v7 = vld [vmem:[%s4058_s25 + $0x18] sm:$0xff]  ;;  %v528_v14 = vld [vmem:[%s4058_s25 + $0x20] sm:$0xff]  ;;  %v529_v16 = vld [vmem:[%s4058_s25 + $0x28] sm:$0xff]  ;;  %1094 = vmatprep.subr.bf16.mxu1 %v3133_v13  ;;  %s516_s26 = scalar_lea.vmem [#allocation14], %s515_s23  ;;  %s2499_s4 = scalar_lea.sflag [#allocation5], %s515_s23 }
  0xc9   : > { %v541_v11 = vpack.c.bf16 %v527_v7, %v526_v6  ;;  %v542_v18 = vpack.c.bf16 %v529_v16, %v528_v14  ;;  %v530_v22 = vld [vmem:[%s4058_s25 + $0x30] sm:$0xff]  ;;  %v531_v23 = vld [vmem:[%s4058_s25 + $0x38] sm:$0xff]  ;;  %v532_v29 = vld [vmem:[%s4058_s25 + $0x40] sm:$0xff]  ;;  %s2511_s24 = sshll.u32 %s516_s26, 4  ;;  %s3768_s13 = smov [#allocation14]   ;;  %s4804_s24 = int_to_ptr.vmem [resolvable:$true] %s2511_s24 }
  0xca   : > { %2646 = vmatmul.mubr.msk.bf16.vlgmr.msra.gmra.mrb[0].mxu0 %vm572_vm0, %v540_v5  ;;  %v543_v27 = vpack.c.bf16 %v531_v23, %v530_v22  ;;  %v533_v30 = vld [vmem:[%s4058_s25 + $0x48] sm:$0xff]  ;;  %v3148_v31 = vld [vmem:[%s4847_s3 + $0x74] ss:$8 sps:$4 sm:$0xff]   ;;  %v3150_v32 = vld [vmem:[%s4847_s3 + $0x70] ss:$8 sps:$4 sm:$0xff]   ;;  %s3675_s6 = scalar_lea.vmem %s4804_s24, 16 }
  0xcb   : > { %639 = vmatprep.mubr.bf16.mxu0 %v3765_v0  ;;  %1095 = vmatpush1.bf16.msra.mxu1 %v3135_v15  ;;  %v3151_v33 = vld [vmem:[%s4847_s3 + $0x84] ss:$8 sps:$4 sm:$0xff]   ;;  %v544_v34 = vpack.c.bf16 %v533_v30, %v532_v29  ;;  %v3153_v35 = vld [vmem:[%s4847_s3 + $0x80] ss:$8 sps:$4 sm:$0xff]   ;;  %v534_v36 = vld [vmem:[%s4058_s25 + $0x50] sm:$0xff]  ;;  %v553_v15 = vshrl.u32 %v552_v12, 7  ;;  %p3676_p4 = scmp.ne.s32.totalorder %s4804_s24, %s3675_s6 }
  0xcc   : > { %1096 = vmatprep.subr.bf16.mxu1 %v3136_v17  ;;  %v535_v37 = vld [vmem:[%s4058_s25 + $0x58] sm:$0xff]  ;;  %v536_v41 = vld [vmem:[%s4058_s25 + $0x60] sm:$0xff]  ;;  %v537_v42 = vld [vmem:[%s4058_s25 + $0x68] sm:$0xff]  ;;  %p4898_p7 = scmp.ne.s32.totalorder %s4896_s18, 0  ;;  %s3679_s19 = sshll.u32 %s3768_s13, 4  ;;  %s3680_s19 = int_to_ptr.vmem [resolvable:$false] %s3679_s19 }
  0xcd   : > { %v3154_v38 = vld [vmem:[%s4847_s3 + $0x94] ss:$8 sps:$4 sm:$0xff]   ;;  %v3156_v39 = vld [vmem:[%s4847_s3 + $0x90] ss:$8 sps:$4 sm:$0xff]   ;;  %v545_v40 = vpack.c.bf16 %v535_v37, %v534_v36  ;;  %v546_v43 = vpack.c.bf16 %v537_v42, %v536_v41  ;;  %v3157_v47 = vld [vmem:[%s4847_s3 + $0xa4] ss:$8 sps:$4 sm:$0xff]   ;;  %s4802_s16 = scalar_lea.hbm %s4897_s12, %s4050_s21  ;;  %p3682_p13 = scmp.lt.s32.totalorder %s4804_s24, %s3680_s19 }
  0xce   : > { %v538_v44 = vld [vmem:[%s4058_s25 + $0x70] sm:$0xff]  ;;  %v539_v45 = vld [vmem:[%s4058_s25 + $0x78] sm:$0xff]  ;;  %v3159_v48 = vld [vmem:[%s4847_s3 + $0xa0] ss:$8 sps:$4 sm:$0xff]   ;;  %v4187_v17 = vsub.s32 0, %v553_v15  ;;  %s2449_s25 = sld [smem:[#allocation2]]  ;;  %p3677_p8 = pnand %p3676_p4, %p4898_p7 }
  0xcf   : > { %1097 = vmatpush1.bf16.msra.mxu1 %v3138_v19  ;;  %v547_v46 = vpack.c.bf16 %v539_v45, %v538_v44  ;;  %v3160_v49 = vld [vmem:[%s4847_s3 + $0xb4] ss:$8 sps:$4 sm:$0xff]   ;;  %v3162_v50 = vld [vmem:[%s4847_s3 + $0xb0] ss:$8 sps:$4 sm:$0xff]   ;;  %v3163_v51 = vld [vmem:[%s4847_s3 + $0xc4] ss:$8 sps:$4 sm:$0xff]  }
  0xd0   : > { %1098 = vmatprep.subr.bf16.mxu1 %v3139_v20  ;;  %v3165_v52 = vld [vmem:[%s4847_s3 + $0xc0] ss:$8 sps:$4 sm:$0xff]   ;;  %v3166_v53 = vld [vmem:[%s4847_s3 + $0xd4] ss:$8 sps:$4 sm:$0xff]   ;;  %v3168_v54 = vld [vmem:[%s4847_s3 + $0xd0] ss:$8 sps:$4 sm:$0xff]   ;;  %p3678_p11 = pneg %p3677_p8 }
  0xd1   : > { %v3169_v55 = vld [vmem:[%s4847_s3 + $0xe4] ss:$8 sps:$4 sm:$0xff]   ;;  %v3171_v56 = vld [vmem:[%s4847_s3 + $0xe0] ss:$8 sps:$4 sm:$0xff]   ;;  %v3172_v57 = vld [vmem:[%s4847_s3 + $0xf4] ss:$8 sps:$4 sm:$0xff]  }
  0xd2   : > { %2647 = vmatmul.mubr.msk.bf16.gmra.mrb[4].mxu0 %vm572_vm0, %v541_v11  ;;  %v3174_v58 = vld [vmem:[%s4847_s3 + $0xf0] ss:$8 sps:$4 sm:$0xff]   ;;  %v3178_v62 = vld [vmem:[#allocation8 + $0x10] ss:$8 sps:$4 sm:$0xff]   ;;  %v4192_v19 = vsub.s32 1, %v553_v15  ;;  %s3681_s30 = scalar_lea.vmem %s3680_s19, 32 }
  0xd3   : > { %649 = vmatprep.mubr.bf16.mxu0 %v3765_v0  ;;  %1099 = vmatpush1.bf16.msra.mxu1 %v3141_v21  ;;  %v3175_v59 = vld [vmem:[#allocation8] ss:$8 sps:$4 sm:$0xff]   ;;  %v3177_v60 = vld [vmem:[#allocation8 + $0x4] ss:$8 sps:$4 sm:$0xff]   ;;  %v3180_v61 = vld [vmem:[#allocation8 + $0x14] ss:$8 sps:$4 sm:$0xff]   ;;  %p3683_p1 = scmp.lt.s32.totalorder %s3681_s30, %s3675_s6 }
  0xd4   : > { %1100 = vmatprep.subr.bf16.mxu1 %v3142_v24  ;;  %1583 = vmatprep.subr.bf16.mxu0 %v3177_v60  ;;  %v3183_v63 = vld [vmem:[#allocation8 + $0x24] ss:$8 sps:$4 sm:$0xff]   ;;  %v3186_v1 = vld [vmem:[#allocation8 + $0x34] ss:$8 sps:$4 sm:$0xff]   ;;  %v3184_v2 = vld [vmem:[#allocation8 + $0x30] ss:$8 sps:$4 sm:$0xff]  }
  0xd5   : > { %1584 = vmatpush1.bf16.msra.mxu0 %v3175_v59  ;;  %v3189_v3 = vld [vmem:[#allocation8 + $0x44] ss:$8 sps:$4 sm:$0xff]   ;;  %v3187_v4 = vld [vmem:[#allocation8 + $0x40] ss:$8 sps:$4 sm:$0xff]   ;;  %v3192_v5 = vld [vmem:[#allocation8 + $0x54] ss:$8 sps:$4 sm:$0xff]   ;;  %p3684_p0 = por %p3683_p1, %p3682_p13 }
  0xd6   : > { %1585 = vmatprep.subr.bf16.mxu0 %v3180_v61  ;;  %v3190_v6 = vld [vmem:[#allocation8 + $0x50] ss:$8 sps:$4 sm:$0xff]   ;;  %v3195_v7 = vld [vmem:[#allocation8 + $0x64] ss:$8 sps:$4 sm:$0xff]   ;;  %v3193_v8 = vld [vmem:[#allocation8 + $0x60] ss:$8 sps:$4 sm:$0xff]  }
  0xd7   : > { %1101 = vmatpush1.bf16.msra.mxu1 %v3144_v25  ;;  %v3198_v9 = vld [vmem:[#allocation8 + $0x74] ss:$8 sps:$4 sm:$0xff]   ;;  %v3196_v10 = vld [vmem:[#allocation8 + $0x70] ss:$8 sps:$4 sm:$0xff]   ;;  %v3201_v11 = vld [vmem:[#allocation8 + $0x84] ss:$8 sps:$4 sm:$0xff]   ;;  %p3685_p6 = pnand %p3684_p0, %p3678_p11 }
  0xd8   : > { %1102 = vmatprep.subr.bf16.mxu1 %v3145_v26  ;;  %v3199_v13 = vld [vmem:[#allocation8 + $0x80] ss:$8 sps:$4 sm:$0xff]   ;;  %v3204_v14 = vld [vmem:[#allocation8 + $0x94] ss:$8 sps:$4 sm:$0xff]   ;;  %v3202_v16 = vld [vmem:[#allocation8 + $0x90] ss:$8 sps:$4 sm:$0xff]  }
  0xd9   : > { %1586 = vmatpush1.bf16.msra.mxu0 %v3178_v62 }
  0xda   : > { %2648 = vmatmul.mubr.msk.bf16.gmra.mrb[8].mxu0 %vm572_vm0, %v542_v18  ;;  %1587 = vmatprep.subr.bf16.mxu0 %v3183_v63  ;;  %v550_v18 = vld [vmem:[%s4846_s2] sm:$0x3] }
  0xdb   : > { %659 = vmatprep.mubr.bf16.mxu0 %v3765_v0  ;;  %1103 = vmatpush1.bf16.msra.mxu1 %v3147_v28  ;;  %v4195_v20 = vrot.slane %v550_v18, %v4187_v17  ;;  %v4198_v21 = vrot.slane %v550_v18, %v4192_v19 }
  0xdc   : > { %1104 = vmatprep.subr.bf16.mxu1 %v3148_v31 }
  0xdf   : > { %1105 = vmatpush1.bf16.msra.mxu1 %v3150_v32 }
  0xe0   : > { %1106 = vmatprep.subr.bf16.mxu1 %v3151_v33 }
  0xe2   : > { %2649 = vmatmul.mubr.msk.bf16.gmra.mrb[12].mxu0 %vm572_vm0, %v543_v27 }
  0xe3   : > { %669 = vmatprep.mubr.bf16.mxu0 %v3765_v0  ;;  %1107 = vmatpush1.bf16.msra.mxu1 %v3153_v35 }
  0xe4   : > { %1108 = vmatprep.subr.bf16.mxu1 %v3154_v38 }
  0xe7   : > { %1109 = vmatpush1.bf16.msra.mxu1 %v3156_v39 }
  0xe8   : > { %1110 = vmatprep.subr.bf16.mxu1 %v3157_v47 }
  0xea   : > { %2650 = vmatmul.mubr.msk.bf16.gmra.mrb[16].mxu0 %vm572_vm0, %v544_v34 }
  0xeb   : > { %679 = vmatprep.mubr.bf16.mxu0 %v3765_v0  ;;  %1111 = vmatpush1.bf16.msra.mxu1 %v3159_v48 }
  0xec   : > { %1112 = vmatprep.subr.bf16.mxu1 %v3160_v49 }
  0xef   : > { %1113 = vmatpush1.bf16.msra.mxu1 %v3162_v50 }
  0xf0   : > { %1114 = vmatprep.subr.bf16.mxu1 %v3163_v51 }
  0xf2   : > { %2651 = vmatmul.mubr.msk.bf16.gmra.mrb[20].mxu0 %vm572_vm0, %v545_v40 }
  0xf3   : > { %689 = vmatprep.mubr.bf16.mxu0 %v3765_v0  ;;  %1115 = vmatpush1.bf16.msra.mxu1 %v3165_v52 }
  0xf4   : > { %1116 = vmatprep.subr.bf16.mxu1 %v3166_v53 }
  0xf7   : > { %1117 = vmatpush1.bf16.msra.mxu1 %v3168_v54 }
  0xf8   : > { %1118 = vmatprep.subr.bf16.mxu1 %v3169_v55 }
  0xfa   : > { %2652 = vmatmul.mubr.msk.bf16.gmra.mrb[24].mxu0 %vm572_vm0, %v546_v43 }
  0xfb   : > { %699 = vmatprep.mubr.bf16.mxu0 %v3765_v0  ;;  %1119 = vmatpush1.bf16.msra.mxu1 %v3171_v56  ;;  %v3181_v0 = vld [vmem:[#allocation8 + $0x20] ss:$8 sps:$4 sm:$0xff]  }
  0xfc   : > { %1120 = vmatprep.subr.bf16.mxu1 %v3172_v57  ;;  %1588 = vmatpush1.bf16.msra.mxu0 %v3181_v0 }
  0xfd   : > { %1589 = vmatprep.subr.bf16.mxu0 %v3186_v1 }
  0xff   : > { %1121 = vmatpush1.bf16.msra.mxu1 %v3174_v58 }
 0x100   : > { %1590 = vmatpush1.bf16.msra.mxu0 %v3184_v2 }
 0x101   : > { %1591 = vmatprep.subr.bf16.mxu0 %v3189_v3 }
 0x102   : > { %2653 = vmatmul.mubr.msk.bf16.gmra.mrb[28].mxu0 %vm572_vm0, %v547_v46 }
 0x104   : > { %1592 = vmatpush1.bf16.msra.mxu0 %v3187_v4 }
 0x105   : > { %1593 = vmatprep.subr.bf16.mxu0 %v3192_v5 }
 0x108   : > { %1594 = vmatpush1.bf16.msra.mxu0 %v3190_v6 }
 0x109   : > { %1595 = vmatprep.subr.bf16.mxu0 %v3195_v7 }
 0x10c   : > { %1596 = vmatpush1.bf16.msra.mxu0 %v3193_v8 }
 0x10d   : > { %1597 = vmatprep.subr.bf16.mxu0 %v3198_v9 }
 0x110   : > { %1598 = vmatpush1.bf16.msra.mxu0 %v3196_v10 }
 0x111   : > { %1599 = vmatprep.subr.bf16.mxu0 %v3201_v11 }
 0x114   : > { %1600 = vmatpush1.bf16.msra.mxu0 %v3199_v13 }
 0x115   : > { %1601 = vmatprep.subr.bf16.mxu0 %v3204_v14 }
 0x118   : > { %1602 = vmatpush1.bf16.msra.mxu0 %v3202_v16 }
 0x19d   : > { %v631_v22 = vpop.f32.mrb[0].mxu0 }
 0x19e   : > { %v4201_v23 = vadd.f32 %v631_v22, %v4195_v20  ;;  %v633_v24 = vpop.f32.mrb[1].mxu0 }
 0x19f   : > { %v634_v25 = vadd.f32 %v633_v24, %v4198_v21  ;;  %v635_v26 = vpop.f32.mrb[2].mxu0 }
 0x1a0   : > { %v742_v27 = vmul.f32 1.442695, %v4201_v23  ;;  %v636_v28 = vadd.f32 %v635_v26, %v4195_v20  ;;  %v637_v29 = vpop.f32.mrb[3].mxu0  ;;  %vm710_vm1 = vcmp.gt.f32.partialorder %v4201_v23, 0.0 }
 0x1a1   : > { %v744_v30 = vmul.f32 1.442695, %v634_v25  ;;  %v638_v31 = vadd.f32 %v637_v29, %v4198_v21  ;;  %vm711_vm2 = vcmp.gt.f32.partialorder %v634_v25, 0.0 }
 0x1a2   : > { %3247 = vpow2.f32 %v742_v27  ;;  %v746_v32 = vmul.f32 1.442695, %v636_v28  ;;  %vm712_vm4 = vcmp.gt.f32.partialorder %v636_v28, 0.0 }
 0x1a3   : > { %3249 = vpow2.f32 %v744_v30  ;;  %v748_v33 = vmul.f32 1.442695, %v638_v31  ;;  %vm713_vm3 = vcmp.gt.f32.partialorder %v638_v31, 0.0 }
 0x1a4   : > { %3251 = vpow2.f32 %v746_v32 }
 0x1a5   : > { %3253 = vpow2.f32 %v748_v33  ;;  %v641_v34 = vpop.f32.mrb[4].mxu0 }
 0x1a6   : > { %v4208_v35 = vadd.f32 %v641_v34, %v4195_v20  ;;  %v643_v36 = vpop.f32.mrb[5].mxu0 }
 0x1a7   : > { %v4211_v37 = vadd.f32 %v643_v36, %v4198_v21  ;;  %v645_v38 = vpop.f32.mrb[6].mxu0 }
 0x1a8   : > { %v750_v39 = vmul.f32 1.442695, %v4208_v35  ;;  %v4215_v40 = vadd.f32 %v645_v38, %v4195_v20  ;;  %v647_v41 = vpop.f32.mrb[7].mxu0  ;;  %vm714_vm5 = vcmp.gt.f32.partialorder %v4208_v35, 0.0 }
 0x1a9   : > { %v752_v42 = vmul.f32 1.442695, %v4211_v37  ;;  %v4219_v43 = vadd.f32 %v647_v41, %v4198_v21  ;;  %vm715_vm6 = vcmp.gt.f32.partialorder %v4211_v37, 0.0 }
 0x1aa   : > { %3255 = vpow2.f32 %v750_v39  ;;  %v754_v44 = vmul.f32 1.442695, %v4215_v40  ;;  %vm716_vm8 = vcmp.gt.f32.partialorder %v4215_v40, 0.0 }
 0x1ab   : > { %3257 = vpow2.f32 %v752_v42  ;;  %v756_v45 = vmul.f32 1.442695, %v4219_v43  ;;  %vm717_vm7 = vcmp.gt.f32.partialorder %v4219_v43, 0.0 }
 0x1ac   : > { %v3248_v46 = vpop.eup %3247  ;;  %3259 = vpow2.f32 %v754_v44 }
 0x1ad   : > { %v3250_v47 = vpop.eup %3249  ;;  %3261 = vpow2.f32 %v756_v45  ;;  %v651_v48 = vpop.f32.mrb[8].mxu0  ;;  %v2654_v54 = vadd.f32 -1.0, %v3248_v46 }
 0x1ae   : > { %v3252_v49 = vpop.eup %3251  ;;  %v4224_v50 = vadd.f32 %v651_v48, %v4195_v20  ;;  %v653_v51 = vpop.f32.mrb[9].mxu0  ;;  %v2655_v52 = vadd.f32 -1.0, %v3250_v47 }
 0x1af   : > { %v3254_v53 = vpop.eup %3253  ;;  %v4228_v55 = vadd.f32 %v653_v51, %v4198_v21  ;;  %v655_v56 = vpop.f32.mrb[10].mxu0  ;;  %v2656_v57 = vadd.f32 -1.0, %v3252_v49  ;;  %v838_v6 = vsel %vm710_vm1, %v4201_v23, %v2654_v54 }
 0x1b0   : > { %v758_v58 = vmul.f32 1.442695, %v4224_v50  ;;  %v4232_v59 = vadd.f32 %v655_v56, %v4195_v20  ;;  %v657_v60 = vpop.f32.mrb[11].mxu0  ;;  %v2657_v61 = vadd.f32 -1.0, %v3254_v53  ;;  %v839_v1 = vsel %vm711_vm2, %v634_v25, %v2655_v52 }
 0x1b1   : > { %v760_v62 = vmul.f32 1.442695, %v4228_v55  ;;  %v4236_v63 = vadd.f32 %v657_v60, %v4198_v21  ;;  %v840_v7 = vsel %vm712_vm4, %v636_v28, %v2656_v57  ;;  %vm718_vm9 = vcmp.gt.f32.partialorder %v4224_v50, 0.0 }
 0x1b2   : > { %3263 = vpow2.f32 %v758_v58  ;;  %v762_v0 = vmul.f32 1.442695, %v4232_v59  ;;  %v841_v2 = vsel %vm713_vm3, %v638_v31, %v2657_v61  ;;  %v870_v10 = vpack.c.bf16 %v840_v7, %v838_v6 }
 0x1b3   : > { %3265 = vpow2.f32 %v760_v62  ;;  %v764_v3 = vmul.f32 1.442695, %v4236_v63  ;;  %v871_v4 = vpack.c.bf16 %v841_v2, %v839_v1  ;;  %vm719_vm10 = vcmp.gt.f32.partialorder %v4228_v55, 0.0 }
 0x1b4   : > { %v3256_v5 = vpop.eup %3255  ;;  %3267 = vpow2.f32 %v762_v0  ;;  %vm721_vm11 = vcmp.gt.f32.partialorder %v4236_v63, 0.0  ;;  %vm720_vm12 = vcmp.gt.f32.partialorder %v4232_v59, 0.0 }
 0x1b5   : > { %v3258_v8 = vpop.eup %3257  ;;  %3269 = vpow2.f32 %v764_v3  ;;  %v661_v9 = vpop.f32.mrb[12].mxu0  ;;  %1122 = vmatprep.mubr.bf16.mxu1 %v871_v4  ;;  %v2658_v16 = vadd.f32 -1.0, %v3256_v5 }
 0x1b6   : > { %v3260_v11 = vpop.eup %3259  ;;  %v2659_v12 = vadd.f32 -1.0, %v3258_v8  ;;  %v4244_v13 = vadd.f32 %v661_v9, %v4195_v20  ;;  %v663_v14 = vpop.f32.mrb[13].mxu0  ;;  %1123 = vmatmul.mubr.bf16.vlgmr.msra.gmra.mrb[0].mxu1 %v870_v10 }
 0x1b7   : > { %v3262_v15 = vpop.eup %3261  ;;  %v4248_v18 = vadd.f32 %v663_v14, %v4198_v21  ;;  %v665_v22 = vpop.f32.mrb[14].mxu0  ;;  %v2660_v23 = vadd.f32 -1.0, %v3260_v11  ;;  %v842_v38 = vsel %vm714_vm5, %v4208_v35, %v2658_v16 }
 0x1b8   : > { %v2661_v24 = vadd.f32 -1.0, %v3262_v15  ;;  %v766_v25 = vmul.f32 1.442695, %v4244_v13  ;;  %v4252_v26 = vadd.f32 %v665_v22, %v4195_v20  ;;  %v667_v27 = vpop.f32.mrb[15].mxu0  ;;  %v843_v31 = vsel %vm715_vm6, %v4211_v37, %v2659_v12 }
 0x1b9   : > { %v768_v28 = vmul.f32 1.442695, %v4248_v18  ;;  %v4258_v29 = vadd.f32 %v667_v27, %v4198_v21  ;;  %v844_v39 = vsel %vm716_vm8, %v4215_v40, %v2660_v23  ;;  %vm722_vm13 = vcmp.gt.f32.partialorder %v4244_v13, 0.0 }
 0x1ba   : > { %3271 = vpow2.f32 %v766_v25  ;;  %v770_v30 = vmul.f32 1.442695, %v4252_v26  ;;  %v845_v32 = vsel %vm717_vm7, %v4219_v43, %v2661_v24  ;;  %v872_v37 = vpack.c.bf16 %v844_v39, %v842_v38 }
 0x1bb   : > { %3273 = vpow2.f32 %v768_v28  ;;  %v772_v33 = vmul.f32 1.442695, %v4258_v29  ;;  %v873_v34 = vpack.c.bf16 %v845_v32, %v843_v31  ;;  %vm723_vm14 = vcmp.gt.f32.partialorder %v4248_v18, 0.0 }
 0x1bc   : > { %v3264_v36 = vpop.eup %3263  ;;  %3275 = vpow2.f32 %v770_v30  ;;  %vm725_vm15 = vcmp.gt.f32.partialorder %v4258_v29, 0.0  ;;  %vm724_vm0 = vcmp.gt.f32.partialorder %v4252_v26, 0.0 }
 0x1bd   : > { %v3266_v41 = vpop.eup %3265  ;;  %3277 = vpow2.f32 %v772_v33  ;;  %v671_v42 = vpop.f32.mrb[16].mxu0  ;;  %1132 = vmatprep.mubr.bf16.mxu1 %v873_v34  ;;  %v2662_v48 = vadd.f32 -1.0, %v3264_v36 }
 0x1be   : > { %v3268_v43 = vpop.eup %3267  ;;  %v2663_v44 = vadd.f32 -1.0, %v3266_v41  ;;  %v4270_v45 = vadd.f32 %v671_v42, %v4195_v20  ;;  %v673_v46 = vpop.f32.mrb[17].mxu0  ;;  %1133 = vmatmul.mubr.bf16.gmra.mrb[4].mxu1 %v872_v37 }
 0x1bf   : > { %v3270_v47 = vpop.eup %3269  ;;  %v4274_v49 = vadd.f32 %v673_v46, %v4198_v21  ;;  %v675_v35 = vpop.f32.mrb[18].mxu0  ;;  %v2664_v40 = vadd.f32 -1.0, %v3268_v43  ;;  %v846_v2 = vsel %vm718_vm9, %v4224_v50, %v2662_v48 }
 0x1c0   : > { %v2665_v51 = vadd.f32 -1.0, %v3270_v47  ;;  %v774_v52 = vmul.f32 1.442695, %v4270_v45  ;;  %v4278_v53 = vadd.f32 %v675_v35, %v4195_v20  ;;  %v677_v54 = vpop.f32.mrb[19].mxu0  ;;  %v847_v60 = vsel %vm719_vm10, %v4228_v55, %v2663_v44 }
 0x1c1   : > { %v776_v56 = vmul.f32 1.442695, %v4274_v49  ;;  %v4284_v57 = vadd.f32 %v677_v54, %v4198_v21  ;;  %v848_v3 = vsel %vm720_vm12, %v4232_v59, %v2664_v40  ;;  %vm726_vm1 = vcmp.gt.f32.partialorder %v4270_v45, 0.0 }
 0x1c2   : > { %3279 = vpow2.f32 %v774_v52  ;;  %v778_v58 = vmul.f32 1.442695, %v4278_v53  ;;  %v849_v61 = vsel %vm721_vm11, %v4236_v63, %v2665_v51  ;;  %v874_v55 = vpack.c.bf16 %v848_v3, %v846_v2 }
 0x1c3   : > { %3281 = vpow2.f32 %v776_v56  ;;  %v780_v62 = vmul.f32 1.442695, %v4284_v57  ;;  %v875_v0 = vpack.c.bf16 %v849_v61, %v847_v60  ;;  %vm727_vm2 = vcmp.gt.f32.partialorder %v4274_v49, 0.0 }
 0x1c4   : > { %v3272_v1 = vpop.eup %3271  ;;  %3283 = vpow2.f32 %v778_v58  ;;  %vm729_vm3 = vcmp.gt.f32.partialorder %v4284_v57, 0.0  ;;  %vm728_vm4 = vcmp.gt.f32.partialorder %v4278_v53, 0.0 }
 0x1c5   : > { %v3274_v4 = vpop.eup %3273  ;;  %3285 = vpow2.f32 %v780_v62  ;;  %v681_v5 = vpop.f32.mrb[20].mxu0  ;;  %1142 = vmatprep.mubr.bf16.mxu1 %v875_v0  ;;  %v2666_v10 = vadd.f32 -1.0, %v3272_v1 }
 0x1c6   : > { %v3276_v63 = vpop.eup %3275  ;;  %v2667_v6 = vadd.f32 -1.0, %v3274_v4  ;;  %v4296_v7 = vadd.f32 %v681_v5, %v4195_v20  ;;  %v683_v8 = vpop.f32.mrb[21].mxu0  ;;  %1143 = vmatmul.mubr.bf16.gmra.mrb[8].mxu1 %v874_v55 }
 0x1c7   : > { %v3278_v9 = vpop.eup %3277  ;;  %v4300_v11 = vadd.f32 %v683_v8, %v4198_v21  ;;  %v685_v50 = vpop.f32.mrb[22].mxu0  ;;  %v2668_v59 = vadd.f32 -1.0, %v3276_v63  ;;  %v850_v32 = vsel %vm722_vm13, %v4244_v13, %v2666_v10 }
 0x1c8   : > { %v2669_v12 = vadd.f32 -1.0, %v3278_v9  ;;  %v782_v14 = vmul.f32 1.442695, %v4296_v7  ;;  %v4304_v15 = vadd.f32 %v685_v50, %v4195_v20  ;;  %v687_v16 = vpop.f32.mrb[23].mxu0  ;;  %v851_v25 = vsel %vm723_vm14, %v4248_v18, %v2667_v6 }
 0x1c9   : > { %v784_v22 = vmul.f32 1.442695, %v4300_v11  ;;  %v4310_v23 = vadd.f32 %v687_v16, %v4198_v21  ;;  %v852_v33 = vsel %vm724_vm0, %v4252_v26, %v2668_v59  ;;  %vm730_vm5 = vcmp.gt.f32.partialorder %v4296_v7, 0.0 }
 0x1ca   : > { %3287 = vpow2.f32 %v782_v14  ;;  %v786_v24 = vmul.f32 1.442695, %v4304_v15  ;;  %v853_v27 = vsel %vm725_vm15, %v4258_v29, %v2669_v12  ;;  %v876_v18 = vpack.c.bf16 %v852_v33, %v850_v32 }
 0x1cb   : > { %3289 = vpow2.f32 %v784_v22  ;;  %v788_v28 = vmul.f32 1.442695, %v4310_v23  ;;  %v877_v30 = vpack.c.bf16 %v853_v27, %v851_v25  ;;  %vm731_vm6 = vcmp.gt.f32.partialorder %v4300_v11, 0.0 }
 0x1cc   : > { %v3280_v31 = vpop.eup %3279  ;;  %3291 = vpow2.f32 %v786_v24  ;;  %vm733_vm7 = vcmp.gt.f32.partialorder %v4310_v23, 0.0  ;;  %vm732_vm8 = vcmp.gt.f32.partialorder %v4304_v15, 0.0 }
 0x1cd   : > { %v3282_v34 = vpop.eup %3281  ;;  %3293 = vpow2.f32 %v788_v28  ;;  %v691_v36 = vpop.f32.mrb[24].mxu0  ;;  %1152 = vmatprep.mubr.bf16.mxu1 %v877_v30  ;;  %v2670_v37 = vadd.f32 -1.0, %v3280_v31 }
 0x1ce   : > { %v3284_v29 = vpop.eup %3283  ;;  %v2671_v38 = vadd.f32 -1.0, %v3282_v34  ;;  %v4322_v39 = vadd.f32 %v691_v36, %v4195_v20  ;;  %v693_v41 = vpop.f32.mrb[25].mxu0  ;;  %1153 = vmatmul.mubr.bf16.gmra.mrb[12].mxu1 %v876_v18 }
 0x1cf   : > { %v3286_v42 = vpop.eup %3285  ;;  %v4326_v43 = vadd.f32 %v693_v41, %v4198_v21  ;;  %v695_v13 = vpop.f32.mrb[26].mxu0  ;;  %v2672_v26 = vadd.f32 -1.0, %v3284_v29  ;;  %v854_v61 = vsel %vm726_vm1, %v4270_v45, %v2670_v37 }
 0x1d0   : > { %v2673_v44 = vadd.f32 -1.0, %v3286_v42  ;;  %v790_v46 = vmul.f32 1.442695, %v4322_v39  ;;  %v4330_v47 = vadd.f32 %v695_v13, %v4195_v20  ;;  %v697_v48 = vpop.f32.mrb[27].mxu0  ;;  %v855_v52 = vsel %vm727_vm2, %v4274_v49, %v2671_v38 }
 0x1d1   : > { %v792_v35 = vmul.f32 1.442695, %v4326_v43  ;;  %v4336_v40 = vadd.f32 %v697_v48, %v4198_v21  ;;  %v856_v62 = vsel %vm728_vm4, %v4278_v53, %v2672_v26  ;;  %vm734_vm9 = vcmp.gt.f32.partialorder %v4322_v39, 0.0 }
 0x1d2   : > { %3295 = vpow2.f32 %v790_v46  ;;  %v794_v51 = vmul.f32 1.442695, %v4330_v47  ;;  %v857_v54 = vsel %vm729_vm3, %v4284_v57, %v2673_v44  ;;  %v878_v49 = vpack.c.bf16 %v856_v62, %v854_v61  ;;  %v3216_v61 = vld [vmem:[#allocation8 + $0xd4] ss:$8 sps:$4 sm:$0xff]   ;;  %v3214_v62 = vld [vmem:[#allocation8 + $0xd0] ss:$8 sps:$4 sm:$0xff]  }
 0x1d3   : > { %3297 = vpow2.f32 %v792_v35  ;;  %v796_v56 = vmul.f32 1.442695, %v4336_v40  ;;  %v879_v58 = vpack.c.bf16 %v857_v54, %v855_v52  ;;  %vm736_vm10 = vcmp.gt.f32.partialorder %v4330_v47, 0.0  ;;  %v3205_v52 = vld [vmem:[#allocation8 + $0xa0] ss:$8 sps:$4 sm:$0xff]  }
 0x1d4   : > { %v3288_v60 = vpop.eup %3287  ;;  %3299 = vpow2.f32 %v794_v51  ;;  %vm735_vm11 = vcmp.gt.f32.partialorder %v4326_v43, 0.0  ;;  %vm737_vm12 = vcmp.gt.f32.partialorder %v4336_v40, 0.0  ;;  %v3207_v51 = vld [vmem:[#allocation8 + $0xa4] ss:$8 sps:$4 sm:$0xff]   ;;  %v3210_v54 = vld [vmem:[#allocation8 + $0xb4] ss:$8 sps:$4 sm:$0xff]  }
 0x1d5   : > { %v3290_v0 = vpop.eup %3289  ;;  %3301 = vpow2.f32 %v796_v56  ;;  %v701_v1 = vpop.f32.mrb[28].mxu0  ;;  %1162 = vmatprep.mubr.bf16.mxu1 %v879_v58  ;;  %v2674_v55 = vadd.f32 -1.0, %v3288_v60  ;;  %1603 = vmatprep.subr.bf16.mxu0 %v3207_v51  ;;  %v3208_v56 = vld [vmem:[#allocation8 + $0xb0] ss:$8 sps:$4 sm:$0xff]   ;;  %v3213_v58 = vld [vmem:[#allocation8 + $0xc4] ss:$8 sps:$4 sm:$0xff]  }
 0x1d6   : > { %v3292_v57 = vpop.eup %3291  ;;  %v2675_v2 = vadd.f32 -1.0, %v3290_v0  ;;  %v4348_v3 = vadd.f32 %v701_v1, %v4195_v20  ;;  %v703_v4 = vpop.f32.mrb[29].mxu0  ;;  %1163 = vmatmul.mubr.bf16.gmra.mrb[16].mxu1 %v878_v49  ;;  %1604 = vmatpush1.bf16.msra.mxu0 %v3205_v52  ;;  %v3211_v60 = vld [vmem:[#allocation8 + $0xc0] ss:$8 sps:$4 sm:$0xff]   ;;  %v3219_v0 = vld [vmem:[#allocation8 + $0xe4] ss:$8 sps:$4 sm:$0xff]  }
 0x1d7   : > { %v3294_v5 = vpop.eup %3293  ;;  %v704_v63 = vadd.f32 %v703_v4, %v4198_v21  ;;  %v705_v45 = vpop.f32.mrb[30].mxu0  ;;  %v2676_v53 = vadd.f32 -1.0, %v3292_v57  ;;  %v858_v25 = vsel %vm730_vm5, %v4296_v7, %v2674_v55  ;;  %1605 = vmatprep.subr.bf16.mxu0 %v3210_v54  ;;  %v3217_v1 = vld [vmem:[#allocation8 + $0xe0] ss:$8 sps:$4 sm:$0xff]   ;;  %v3222_v49 = vld [vmem:[#allocation8 + $0xf4] ss:$8 sps:$4 sm:$0xff]  }
 0x1d8   : > { %v2677_v6 = vadd.f32 -1.0, %v3294_v5  ;;  %v798_v8 = vmul.f32 1.442695, %v4348_v3  ;;  %v706_v9 = vadd.f32 %v705_v45, %v4195_v20  ;;  %v707_v10 = vpop.f32.mrb[31].mxu0  ;;  %v859_v14 = vsel %vm731_vm6, %v4300_v11, %v2675_v2  ;;  %v3220_v57 = vld [vmem:[#allocation8 + $0xf0] ss:$8 sps:$4 sm:$0xff]  }
 0x1d9   : > { %v800_v50 = vmul.f32 1.442695, %v704_v63  ;;  %v708_v59 = vadd.f32 %v707_v10, %v4198_v21  ;;  %v860_v27 = vsel %vm732_vm8, %v4304_v15, %v2676_v53  ;;  %vm738_vm13 = vcmp.gt.f32.partialorder %v4348_v3, 0.0  ;;  %v3223_v2 = vld [vmem:[#allocation11 + $0x40] sm:$0xff]   ;;  %v3225_v4 = vld [vmem:[#allocation11 + $0x48] sm:$0xff]   ;;  %v3227_v55 = vld [vmem:[#allocation11 + $0x50] sm:$0xff]  }
 0x1da   : > { %3303 = vpow2.f32 %v798_v8  ;;  %v802_v12 = vmul.f32 1.442695, %v706_v9  ;;  %v861_v16 = vsel %vm733_vm7, %v4310_v23, %v2677_v6  ;;  %v880_v11 = vpack.c.bf16 %v860_v27, %v858_v25  ;;  %1606 = vmatpush1.bf16.msra.mxu0 %v3208_v56  ;;  %2876 = vmatprep.subr.bf16.mxu1 %v3223_v2  ;;  %v3226_v5 = vld [vmem:[#allocation11 + $0x8] sm:$0xff]   ;;  %v3229_v45 = vld [vmem:[#allocation11 + $0x58] sm:$0xff]   ;;  %v3231_v6 = vld [vmem:[#allocation11 + $0x60] sm:$0xff]  }
 0x1db   : > { %3305 = vpow2.f32 %v800_v50  ;;  %v804_v22 = vmul.f32 1.442695, %v708_v59  ;;  %v881_v24 = vpack.c.bf16 %v861_v16, %v859_v14  ;;  %vm740_vm14 = vcmp.gt.f32.partialorder %v706_v9, 0.0  ;;  %1607 = vmatprep.subr.bf16.mxu0 %v3213_v58  ;;  %v3230_v53 = vld [vmem:[#allocation11 + $0x18] sm:$0xff]   ;;  %v3232_v8 = vld [vmem:[#allocation11 + $0x20] sm:$0xff]  }
 0x1dc   : > { %v3296_v20 = vpop.eup %3295  ;;  %3307 = vpow2.f32 %v802_v12  ;;  %vm739_vm15 = vcmp.gt.f32.partialorder %v704_v63, 0.0  ;;  %vm741_vm0 = vcmp.gt.f32.partialorder %v708_v59, 0.0 }
 0x1dd   : > { %v3298_v21 = vpop.eup %3297  ;;  %v2678_v28 = vadd.f32 -1.0, %v3296_v20  ;;  %3309 = vpow2.f32 %v804_v22  ;;  %1172 = vmatprep.mubr.bf16.mxu1 %v881_v24 }
 0x1de   : > { %v3300_v30 = vpop.eup %3299  ;;  %v2679_v23 = vadd.f32 -1.0, %v3298_v21  ;;  %1173 = vmatmul.mubr.bf16.gmra.mrb[20].mxu1 %v880_v11  ;;  %1608 = vmatpush1.bf16.msra.mxu0 %v3211_v60 }
 0x1df   : > { %v3302_v31 = vpop.eup %3301  ;;  %v2680_v32 = vadd.f32 -1.0, %v3300_v30  ;;  %v862_v7 = vsel %vm734_vm9, %v4322_v39, %v2678_v28  ;;  %1609 = vmatprep.subr.bf16.mxu0 %v3216_v61 }
 0x1e0   : > { %v2681_v33 = vadd.f32 -1.0, %v3302_v31  ;;  %v863_v34 = vsel %vm735_vm11, %v4326_v43, %v2679_v23 }
 0x1e1   : > { %v864_v15 = vsel %vm736_vm10, %v4330_v47, %v2680_v32 }
 0x1e2   : > { %v865_v36 = vsel %vm737_vm12, %v4336_v40, %v2681_v33  ;;  %v882_v18 = vpack.c.bf16 %v864_v15, %v862_v7  ;;  %1610 = vmatpush1.bf16.msra.mxu0 %v3214_v62 }
 0x1e3   : > { %v883_v29 = vpack.c.bf16 %v865_v36, %v863_v34  ;;  %1611 = vmatprep.subr.bf16.mxu0 %v3219_v0 }
 0x1e4   : > { %v3304_v38 = vpop.eup %3303 }
 0x1e5   : > { %v3306_v41 = vpop.eup %3305  ;;  %v2682_v42 = vadd.f32 -1.0, %v3304_v38  ;;  %1182 = vmatprep.mubr.bf16.mxu1 %v883_v29 }
 0x1e6   : > { %v3308_v37 = vpop.eup %3307  ;;  %v2683_v13 = vadd.f32 -1.0, %v3306_v41  ;;  %1183 = vmatmul.mubr.bf16.gmra.mrb[24].mxu1 %v882_v18  ;;  %1612 = vmatpush1.bf16.msra.mxu0 %v3217_v1 }
 0x1e7   : > { %v3310_v26 = vpop.eup %3309  ;;  %v2684_v44 = vadd.f32 -1.0, %v3308_v37  ;;  %v866_v43 = vsel %vm738_vm13, %v4348_v3, %v2682_v42  ;;  %1613 = vmatprep.subr.bf16.mxu0 %v3222_v49  ;;  %v3224_v3 = vld [vmem:[#allocation11] sm:$0xff]  }
 0x1e8   : > { %v2685_v39 = vadd.f32 -1.0, %v3310_v26  ;;  %v867_v47 = vsel %vm739_vm15, %v704_v63, %v2683_v13  ;;  %2877 = vmatpush3.bf16.msra.mxu1 %v3224_v3  ;;  %v3228_v63 = vld [vmem:[#allocation11 + $0x10] sm:$0xff]  }
 0x1e9   : > { %v868_v46 = vsel %vm740_vm14, %v706_v9, %v2684_v44  ;;  %2878 = vmatprep.subr.bf16.mxu1 %v3225_v4  ;;  %v918_v9 = vld [vmem:[#allocation6] sm:$0x3] }
 0x1ea   : > { %v869_v48 = vsel %vm741_vm0, %v708_v59, %v2685_v39  ;;  %v884_v35 = vpack.c.bf16 %v868_v46, %v866_v43  ;;  %1614 = vmatpush1.bf16.msra.mxu0 %v3220_v57  ;;  %v4375_v10 = vrot.slane %v918_v9, %v4187_v17  ;;  %v4378_v50 = vrot.slane %v918_v9, %v4192_v19 }
 0x1eb   : > { %v885_v40 = vpack.c.bf16 %v869_v48, %v867_v47 }
 0x1ec   : > { %2879 = vmatpush3.bf16.msra.mxu1 %v3226_v5 }
 0x1ed   : > { %1192 = vmatprep.mubr.bf16.mxu1 %v885_v40  ;;  %2880 = vmatprep.subr.bf16.mxu1 %v3227_v55 }
 0x1ee   : > { %1193 = vmatmul.mubr.bf16.gmra.mrb[28].mxu1 %v884_v35 }
 0x1f0   : > { %2881 = vmatpush3.bf16.msra.mxu1 %v3228_v63 }
 0x1f1   : > { %2882 = vmatprep.subr.bf16.mxu1 %v3229_v45 }
 0x1f4   : > { %2883 = vmatpush3.bf16.msra.mxu1 %v3230_v53 }
 0x1f5   : > { %2884 = vmatprep.subr.bf16.mxu1 %v3231_v6 }
 0x1f8   : > { %2885 = vmatpush3.bf16.msra.mxu1 %v3232_v8 }
 0x289   : > { %v1124_v59 = vpop.f32.mrb[0].mxu1 }
 0x28a   : > { %v1125_v12 = vadd.f32 %v1124_v59, %v4375_v10  ;;  %v1126_v14 = vpop.f32.mrb[1].mxu1 }
 0x28b   : > { %v1127_v16 = vadd.f32 %v1126_v14, %v4378_v50  ;;  %v1128_v22 = vpop.f32.mrb[2].mxu1 }
 0x28c   : > { %v1235_v24 = vmul.f32 1.442695, %v1125_v12  ;;  %v1129_v20 = vadd.f32 %v1128_v22, %v4375_v10  ;;  %v1130_v25 = vpop.f32.mrb[3].mxu1  ;;  %vm1203_vm1 = vcmp.gt.f32.partialorder %v1125_v12, 0.0 }
 0x28d   : > { %v1237_v27 = vmul.f32 1.442695, %v1127_v16  ;;  %v1131_v21 = vadd.f32 %v1130_v25, %v4378_v50  ;;  %vm1204_vm3 = vcmp.gt.f32.partialorder %v1127_v16, 0.0 }
 0x28e   : > { %3311 = vpow2.f32 %v1235_v24  ;;  %v1239_v28 = vmul.f32 1.442695, %v1129_v20  ;;  %vm1205_vm2 = vcmp.gt.f32.partialorder %v1129_v20, 0.0 }
 0x28f   : > { %3313 = vpow2.f32 %v1237_v27  ;;  %v1241_v11 = vmul.f32 1.442695, %v1131_v21  ;;  %vm1206_vm4 = vcmp.gt.f32.partialorder %v1131_v21, 0.0 }
 0x290   : > { %3315 = vpow2.f32 %v1239_v28 }
 0x291   : > { %3317 = vpow2.f32 %v1241_v11  ;;  %v1134_v30 = vpop.f32.mrb[4].mxu1 }
 0x292   : > { %v4385_v23 = vadd.f32 %v1134_v30, %v4375_v10  ;;  %v1136_v31 = vpop.f32.mrb[5].mxu1 }
 0x293   : > { %v4388_v32 = vadd.f32 %v1136_v31, %v4378_v50  ;;  %v1138_v33 = vpop.f32.mrb[6].mxu1 }
 0x294   : > { %v1243_v7 = vmul.f32 1.442695, %v4385_v23  ;;  %v4392_v15 = vadd.f32 %v1138_v33, %v4375_v10  ;;  %v1140_v34 = vpop.f32.mrb[7].mxu1  ;;  %vm1207_vm5 = vcmp.gt.f32.partialorder %v4385_v23, 0.0 }
 0x295   : > { %v1245_v36 = vmul.f32 1.442695, %v4388_v32  ;;  %v4396_v18 = vadd.f32 %v1140_v34, %v4378_v50  ;;  %vm1208_vm6 = vcmp.gt.f32.partialorder %v4388_v32, 0.0 }
 0x296   : > { %3319 = vpow2.f32 %v1243_v7  ;;  %v1247_v29 = vmul.f32 1.442695, %v4392_v15  ;;  %vm1209_vm8 = vcmp.gt.f32.partialorder %v4392_v15, 0.0 }
 0x297   : > { %3321 = vpow2.f32 %v1245_v36  ;;  %v1249_v38 = vmul.f32 1.442695, %v4396_v18  ;;  %vm1210_vm7 = vcmp.gt.f32.partialorder %v4396_v18, 0.0 }
 0x298   : > { %v3312_v41 = vpop.eup %3311  ;;  %3323 = vpow2.f32 %v1247_v29 }
 0x299   : > { %v3314_v42 = vpop.eup %3313  ;;  %v2718_v37 = vadd.f32 -1.0, %v3312_v41  ;;  %3325 = vpow2.f32 %v1249_v38  ;;  %v1144_v13 = vpop.f32.mrb[8].mxu1 }
 0x29a   : > { %v3316_v26 = vpop.eup %3315  ;;  %v4401_v44 = vadd.f32 %v1144_v13, %v4375_v10  ;;  %v1146_v39 = vpop.f32.mrb[9].mxu1  ;;  %v2719_v35 = vadd.f32 -1.0, %v3314_v42 }
 0x29b   : > { %v3318_v43 = vpop.eup %3317  ;;  %v2720_v46 = vadd.f32 -1.0, %v3316_v26  ;;  %v4404_v47 = vadd.f32 %v1146_v39, %v4378_v50  ;;  %v1148_v48 = vpop.f32.mrb[10].mxu1  ;;  %v1331_v56 = vsel %vm1203_vm1, %v1125_v12, %v2718_v37 }
 0x29c   : > { %v2721_v40 = vadd.f32 -1.0, %v3318_v43  ;;  %v1251_v51 = vmul.f32 1.442695, %v4401_v44  ;;  %v4408_v52 = vadd.f32 %v1148_v48, %v4375_v10  ;;  %v1150_v54 = vpop.f32.mrb[11].mxu1  ;;  %v1332_v57 = vsel %vm1204_vm3, %v1127_v16, %v2719_v35 }
 0x29d   : > { %v1333_v58 = vsel %vm1205_vm2, %v1129_v20, %v2720_v46  ;;  %v1253_v60 = vmul.f32 1.442695, %v4404_v47  ;;  %v4412_v61 = vadd.f32 %v1150_v54, %v4378_v50  ;;  %vm1211_vm9 = vcmp.gt.f32.partialorder %v4401_v44, 0.0 }
 0x29e   : > { %v1363_v62 = vpack.c.bf16 %v1333_v58, %v1331_v56  ;;  %3327 = vpow2.f32 %v1251_v51  ;;  %v1255_v0 = vmul.f32 1.442695, %v4408_v52  ;;  %v1334_v2 = vsel %vm1206_vm4, %v1131_v21, %v2721_v40 }
 0x29f   : > { %3329 = vpow2.f32 %v1253_v60  ;;  %v1257_v1 = vmul.f32 1.442695, %v4412_v61  ;;  %v1364_v5 = vpack.c.bf16 %v1334_v2, %v1332_v57  ;;  %vm1212_vm10 = vcmp.gt.f32.partialorder %v4404_v47, 0.0 }
 0x2a0   : > { %v3320_v49 = vpop.eup %3319  ;;  %3331 = vpow2.f32 %v1255_v0  ;;  %vm1214_vm11 = vcmp.gt.f32.partialorder %v4412_v61, 0.0  ;;  %vm1213_vm12 = vcmp.gt.f32.partialorder %v4408_v52, 0.0 }
 0x2a1   : > { %v3322_v3 = vpop.eup %3321  ;;  %3333 = vpow2.f32 %v1257_v1  ;;  %v1154_v4 = vpop.f32.mrb[12].mxu1  ;;  %v2722_v8 = vadd.f32 -1.0, %v3320_v49  ;;  %1615 = vmatprep.mubr.bf16.mxu0 %v1364_v5 }
 0x2a2   : > { %v3324_v55 = vpop.eup %3323  ;;  %v2723_v63 = vadd.f32 -1.0, %v3322_v3  ;;  %v4417_v45 = vadd.f32 %v1154_v4, %v4375_v10  ;;  %v1156_v53 = vpop.f32.mrb[13].mxu1  ;;  %1616 = vmatmul.mubr.bf16.vlgmr.msra.gmra.mrb[32].mxu0 %v1363_v62 }
 0x2a3   : > { %v3326_v6 = vpop.eup %3325  ;;  %v4421_v9 = vadd.f32 %v1156_v53, %v4378_v50  ;;  %v1158_v59 = vpop.f32.mrb[14].mxu1  ;;  %v2724_v12 = vadd.f32 -1.0, %v3324_v55  ;;  %v1335_v33 = vsel %vm1207_vm5, %v4385_v23, %v2722_v8 }
 0x2a4   : > { %v2725_v14 = vadd.f32 -1.0, %v3326_v6  ;;  %v1259_v16 = vmul.f32 1.442695, %v4417_v45  ;;  %v4425_v22 = vadd.f32 %v1158_v59, %v4375_v10  ;;  %v1160_v24 = vpop.f32.mrb[15].mxu1  ;;  %v1336_v21 = vsel %vm1208_vm6, %v4388_v32, %v2723_v63 }
 0x2a5   : > { %v1261_v20 = vmul.f32 1.442695, %v4421_v9  ;;  %v4431_v25 = vadd.f32 %v1160_v24, %v4378_v50  ;;  %v1337_v7 = vsel %vm1209_vm8, %v4392_v15, %v2724_v12  ;;  %vm1215_vm13 = vcmp.gt.f32.partialorder %v4417_v45, 0.0 }
 0x2a6   : > { %3335 = vpow2.f32 %v1259_v16  ;;  %v1263_v27 = vmul.f32 1.442695, %v4425_v22  ;;  %v1338_v28 = vsel %vm1210_vm7, %v4396_v18, %v2725_v14  ;;  %v1365_v32 = vpack.c.bf16 %v1337_v7, %v1335_v33 }
 0x2a7   : > { %3337 = vpow2.f32 %v1261_v20  ;;  %v1265_v11 = vmul.f32 1.442695, %v4431_v25  ;;  %v1366_v30 = vpack.c.bf16 %v1338_v28, %v1336_v21  ;;  %vm1216_vm14 = vcmp.gt.f32.partialorder %v4421_v9, 0.0 }
 0x2a8   : > { %v3328_v31 = vpop.eup %3327  ;;  %3339 = vpow2.f32 %v1263_v27  ;;  %vm1218_vm15 = vcmp.gt.f32.partialorder %v4431_v25, 0.0  ;;  %vm1217_vm0 = vcmp.gt.f32.partialorder %v4425_v22, 0.0 }
 0x2a9   : > { %v3330_v34 = vpop.eup %3329  ;;  %3341 = vpow2.f32 %v1265_v11  ;;  %v1164_v36 = vpop.f32.mrb[16].mxu1  ;;  %1625 = vmatprep.mubr.bf16.mxu0 %v1366_v30  ;;  %v2726_v37 = vadd.f32 -1.0, %v3328_v31 }
 0x2aa   : > { %v3332_v18 = vpop.eup %3331  ;;  %v2727_v29 = vadd.f32 -1.0, %v3330_v34  ;;  %v4443_v38 = vadd.f32 %v1164_v36, %v4375_v10  ;;  %v1166_v41 = vpop.f32.mrb[17].mxu1  ;;  %1626 = vmatmul.mubr.bf16.gmra.mrb[36].mxu0 %v1365_v32 }
 0x2ab   : > { %v3334_v42 = vpop.eup %3333  ;;  %v4447_v13 = vadd.f32 %v1166_v41, %v4378_v50  ;;  %v1168_v23 = vpop.f32.mrb[18].mxu1  ;;  %v2728_v15 = vadd.f32 -1.0, %v3332_v18  ;;  %v1339_v62 = vsel %vm1211_vm9, %v4401_v44, %v2726_v37 }
 0x2ac   : > { %v2729_v26 = vadd.f32 -1.0, %v3334_v42  ;;  %v1267_v39 = vmul.f32 1.442695, %v4443_v38  ;;  %v4451_v43 = vadd.f32 %v1168_v23, %v4375_v10  ;;  %v1170_v46 = vpop.f32.mrb[19].mxu1  ;;  %v1340_v51 = vsel %vm1212_vm10, %v4404_v47, %v2727_v29 }
 0x2ad   : > { %v1269_v48 = vmul.f32 1.442695, %v4447_v13  ;;  %v4457_v35 = vadd.f32 %v1170_v46, %v4378_v50  ;;  %v1341_v0 = vsel %vm1213_vm12, %v4408_v52, %v2728_v15  ;;  %vm1219_vm1 = vcmp.gt.f32.partialorder %v4443_v38, 0.0 }
 0x2ae   : > { %3343 = vpow2.f32 %v1267_v39  ;;  %v1271_v40 = vmul.f32 1.442695, %v4451_v43  ;;  %v1342_v54 = vsel %vm1214_vm11, %v4412_v61, %v2729_v26  ;;  %v1367_v47 = vpack.c.bf16 %v1341_v0, %v1339_v62 }
 0x2af   : > { %3345 = vpow2.f32 %v1269_v48  ;;  %v1273_v56 = vmul.f32 1.442695, %v4457_v35  ;;  %v1368_v58 = vpack.c.bf16 %v1342_v54, %v1340_v51  ;;  %vm1220_vm2 = vcmp.gt.f32.partialorder %v4447_v13, 0.0 }
 0x2b0   : > { %v3336_v60 = vpop.eup %3335  ;;  %3347 = vpow2.f32 %v1271_v40  ;;  %vm1222_vm3 = vcmp.gt.f32.partialorder %v4457_v35, 0.0  ;;  %vm1221_vm4 = vcmp.gt.f32.partialorder %v4451_v43, 0.0 }
 0x2b1   : > { %v3338_v1 = vpop.eup %3337  ;;  %3349 = vpow2.f32 %v1273_v56  ;;  %v1174_v49 = vpop.f32.mrb[20].mxu1  ;;  %1635 = vmatprep.mubr.bf16.mxu0 %v1368_v58  ;;  %v2730_v5 = vadd.f32 -1.0, %v3336_v60 }
 0x2b2   : > { %v3340_v61 = vpop.eup %3339  ;;  %v2731_v57 = vadd.f32 -1.0, %v3338_v1  ;;  %v4469_v2 = vadd.f32 %v1174_v49, %v4375_v10  ;;  %v1176_v3 = vpop.f32.mrb[21].mxu1  ;;  %1636 = vmatmul.mubr.bf16.gmra.mrb[40].mxu0 %v1367_v47 }
 0x2b3   : > { %v3342_v4 = vpop.eup %3341  ;;  %v4473_v55 = vadd.f32 %v1176_v3, %v4378_v50  ;;  %v1178_v44 = vpop.f32.mrb[22].mxu1  ;;  %v2732_v52 = vadd.f32 -1.0, %v3340_v61  ;;  %v1343_v28 = vsel %vm1215_vm13, %v4417_v45, %v2730_v5 }
 0x2b4   : > { %v2733_v63 = vadd.f32 -1.0, %v3342_v4  ;;  %v1275_v53 = vmul.f32 1.442695, %v4469_v2  ;;  %v4477_v6 = vadd.f32 %v1178_v44, %v4375_v10  ;;  %v1180_v8 = vpop.f32.mrb[23].mxu1  ;;  %v1344_v16 = vsel %vm1216_vm14, %v4421_v9, %v2731_v57 }
 0x2b5   : > { %v1277_v59 = vmul.f32 1.442695, %v4473_v55  ;;  %v4483_v12 = vadd.f32 %v1180_v8, %v4378_v50  ;;  %v1345_v11 = vsel %vm1217_vm0, %v4425_v22, %v2732_v52  ;;  %vm1223_vm5 = vcmp.gt.f32.partialorder %v4469_v2, 0.0 }
 0x2b6   : > { %3351 = vpow2.f32 %v1275_v53  ;;  %v1279_v14 = vmul.f32 1.442695, %v4477_v6  ;;  %v1346_v24 = vsel %vm1218_vm15, %v4431_v25, %v2733_v63  ;;  %v1369_v9 = vpack.c.bf16 %v1345_v11, %v1343_v28 }
 0x2b7   : > { %3353 = vpow2.f32 %v1277_v59  ;;  %v1281_v20 = vmul.f32 1.442695, %v4483_v12  ;;  %v1370_v27 = vpack.c.bf16 %v1346_v24, %v1344_v16  ;;  %vm1224_vm6 = vcmp.gt.f32.partialorder %v4473_v55, 0.0 }
 0x2b8   : > { %v3344_v21 = vpop.eup %3343  ;;  %3355 = vpow2.f32 %v1279_v14  ;;  %vm1226_vm7 = vcmp.gt.f32.partialorder %v4483_v12, 0.0  ;;  %vm1225_vm8 = vcmp.gt.f32.partialorder %v4477_v6, 0.0 }
 0x2b9   : > { %v3346_v30 = vpop.eup %3345  ;;  %3357 = vpow2.f32 %v1281_v20  ;;  %v1184_v31 = vpop.f32.mrb[24].mxu1  ;;  %1645 = vmatprep.mubr.bf16.mxu0 %v1370_v27  ;;  %v2734_v32 = vadd.f32 -1.0, %v3344_v21 }
 0x2ba   : > { %v3348_v25 = vpop.eup %3347  ;;  %v2735_v33 = vadd.f32 -1.0, %v3346_v30  ;;  %v4495_v7 = vadd.f32 %v1184_v31, %v4375_v10  ;;  %v1186_v34 = vpop.f32.mrb[25].mxu1  ;;  %1646 = vmatmul.mubr.bf16.gmra.mrb[44].mxu0 %v1369_v9 }
 0x2bb   : > { %v3350_v36 = vpop.eup %3349  ;;  %v4499_v18 = vadd.f32 %v1186_v34, %v4378_v50  ;;  %v1188_v45 = vpop.f32.mrb[26].mxu1  ;;  %v2736_v22 = vadd.f32 -1.0, %v3348_v25  ;;  %v1347_v54 = vsel %vm1219_vm1, %v4443_v38, %v2734_v32 }
 0x2bc   : > { %v2737_v29 = vadd.f32 -1.0, %v3350_v36  ;;  %v1283_v41 = vmul.f32 1.442695, %v4495_v7  ;;  %v4503_v42 = vadd.f32 %v1188_v45, %v4375_v10  ;;  %v1190_v37 = vpop.f32.mrb[27].mxu1  ;;  %v1348_v39 = vsel %vm1220_vm2, %v4447_v13, %v2735_v33 }
 0x2bd   : > { %v1285_v23 = vmul.f32 1.442695, %v4499_v18  ;;  %v4509_v15 = vadd.f32 %v1190_v37, %v4378_v50  ;;  %v1349_v56 = vsel %vm1221_vm4, %v4451_v43, %v2736_v22  ;;  %vm1227_vm9 = vcmp.gt.f32.partialorder %v4495_v7, 0.0 }
 0x2be   : > { %3359 = vpow2.f32 %v1283_v41  ;;  %v1287_v26 = vmul.f32 1.442695, %v4503_v42  ;;  %v1350_v46 = vsel %vm1222_vm3, %v4457_v35, %v2737_v29  ;;  %v1371_v13 = vpack.c.bf16 %v1349_v56, %v1347_v54  ;;  %v3239_v54 = vld [vmem:[%s4853_s9] sm:$0xff]   ;;  %v3240_v56 = vld [vmem:[%s4853_s9 + $0x8] sm:$0xff]  }
 0x2bf   : > { %3361 = vpow2.f32 %v1285_v23  ;;  %v1289_v48 = vmul.f32 1.442695, %v4509_v15  ;;  %v1372_v40 = vpack.c.bf16 %v1350_v46, %v1348_v39  ;;  %vm1229_vm10 = vcmp.gt.f32.partialorder %v4503_v42, 0.0  ;;  %v3234_v39 = vld [vmem:[#allocation11 + $0x28] sm:$0xff]   ;;  %v3235_v46 = vld [vmem:[#allocation11 + $0x70] sm:$0xff]   ;;  %2965 = vmatprep.subr.bf16.mxu0 %v3239_v54 }
 0x2c0   : > { %v3352_v51 = vpop.eup %3351  ;;  %3363 = vpow2.f32 %v1287_v26  ;;  %vm1228_vm11 = vcmp.gt.f32.partialorder %v4499_v18, 0.0  ;;  %vm1230_vm12 = vcmp.gt.f32.partialorder %v4509_v15, 0.0  ;;  %v3233_v26 = vld [vmem:[#allocation11 + $0x68] sm:$0xff]   ;;  %2966 = vmatpush3.bf16.msra.mxu0 %v3239_v54 }
 0x2c1   : > { %v3354_v58 = vpop.eup %3353  ;;  %3365 = vpow2.f32 %v1289_v48  ;;  %v1194_v60 = vpop.f32.mrb[28].mxu1  ;;  %1655 = vmatprep.mubr.bf16.mxu0 %v1372_v40  ;;  %v2738_v47 = vadd.f32 -1.0, %v3352_v51  ;;  %2886 = vmatprep.subr.bf16.mxu1 %v3233_v26  ;;  %v3236_v48 = vld [vmem:[#allocation11 + $0x30] sm:$0xff]   ;;  %v3237_v40 = vld [vmem:[#allocation11 + $0x78] sm:$0xff]  }
 0x2c2   : > { %v3356_v35 = vpop.eup %3355  ;;  %v2739_v62 = vadd.f32 -1.0, %v3354_v58  ;;  %v4521_v0 = vadd.f32 %v1194_v60, %v4375_v10  ;;  %v1196_v1 = vpop.f32.mrb[29].mxu1  ;;  %1656 = vmatmul.mubr.bf16.gmra.mrb[48].mxu0 %v1371_v13  ;;  %2887 = vmatpush3.bf16.msra.mxu1 %v3234_v39  ;;  %v3238_v51 = vld [vmem:[#allocation11 + $0x38] sm:$0xff]   ;;  %v3242_v60 = vld [vmem:[%s4853_s9 + $0x18] sm:$0xff]  }
 0x2c3   : > { %v3358_v49 = vpop.eup %3357  ;;  %v1197_v61 = vadd.f32 %v1196_v1, %v4378_v50  ;;  %v1198_v38 = vpop.f32.mrb[30].mxu1  ;;  %v2740_v57 = vadd.f32 -1.0, %v3356_v35  ;;  %v1351_v16 = vsel %vm1223_vm5, %v4469_v2, %v2738_v47  ;;  %2888 = vmatprep.subr.bf16.mxu1 %v3235_v46  ;;  %2967 = vmatprep.subr.bf16.mxu0 %v3240_v56  ;;  %v3241_v58 = vld [vmem:[%s4853_s9 + $0x10] sm:$0xff]  }
 0x2c4   : > { %v2741_v43 = vadd.f32 -1.0, %v3358_v49  ;;  %v1291_v3 = vmul.f32 1.442695, %v4521_v0  ;;  %v1199_v4 = vadd.f32 %v1198_v38, %v4375_v10  ;;  %v1200_v5 = vpop.f32.mrb[31].mxu1  ;;  %v1352_v53 = vsel %vm1224_vm6, %v4473_v55, %v2739_v62  ;;  %2968 = vmatpush3.bf16.msra.mxu0 %v3240_v56  ;;  %v1411_v13 = vld [vmem:[#allocation9] sm:$0x3] }
 0x2c5   : > { %v1293_v44 = vmul.f32 1.442695, %v1197_v61  ;;  %v1201_v52 = vadd.f32 %v1200_v5, %v4378_v50  ;;  %v1353_v24 = vsel %vm1225_vm8, %v4477_v6, %v2740_v57  ;;  %vm1231_vm13 = vcmp.gt.f32.partialorder %v4521_v0, 0.0  ;;  %2969 = vmatprep.subr.bf16.mxu0 %v3241_v58 }
 0x2c6   : > { %3367 = vpow2.f32 %v1291_v3  ;;  %v1295_v63 = vmul.f32 1.442695, %v1199_v4  ;;  %v1354_v8 = vsel %vm1226_vm7, %v4483_v12, %v2741_v43  ;;  %v1373_v55 = vpack.c.bf16 %v1353_v24, %v1351_v16  ;;  %2889 = vmatpush3.bf16.msra.mxu1 %v3236_v48 }
 0x2c7   : > { %3369 = vpow2.f32 %v1293_v44  ;;  %v1297_v59 = vmul.f32 1.442695, %v1201_v52  ;;  %v1374_v14 = vpack.c.bf16 %v1354_v8, %v1352_v53  ;;  %vm1233_vm14 = vcmp.gt.f32.partialorder %v1199_v4, 0.0  ;;  %2890 = vmatprep.subr.bf16.mxu1 %v3237_v40 }
 0x2c8   : > { %v3360_v10 = vpop.eup %3359  ;;  %3371 = vpow2.f32 %v1295_v63  ;;  %vm1232_vm15 = vcmp.gt.f32.partialorder %v1197_v61, 0.0  ;;  %vm1234_vm0 = vcmp.gt.f32.partialorder %v1201_v52, 0.0  ;;  %2970 = vmatpush3.bf16.msra.mxu0 %v3241_v58  ;;  %v4560_v35 = vrot.slane %v1411_v13, %v4187_v17 }
 0x2c9   : > { %v3362_v50 = vpop.eup %3361  ;;  %v2742_v20 = vadd.f32 -1.0, %v3360_v10  ;;  %3373 = vpow2.f32 %v1297_v59  ;;  %1665 = vmatprep.mubr.bf16.mxu0 %v1374_v14  ;;  %2971 = vmatprep.subr.bf16.mxu0 %v3242_v60  ;;  %v4563_v62 = vrot.slane %v1411_v13, %v4192_v19 }
 0x2ca   : > { %v3364_v27 = vpop.eup %3363  ;;  %v2743_v12 = vadd.f32 -1.0, %v3362_v50  ;;  %1666 = vmatmul.mubr.bf16.gmra.mrb[52].mxu0 %v1373_v55  ;;  %2891 = vmatpush3.bf16.msra.mxu1 %v3238_v51 }
 0x2cb   : > { %v3366_v21 = vpop.eup %3365  ;;  %v2744_v28 = vadd.f32 -1.0, %v3364_v27  ;;  %v1355_v2 = vsel %vm1227_vm9, %v4495_v7, %v2742_v20 }
 0x2cc   : > { %v2745_v11 = vadd.f32 -1.0, %v3366_v21  ;;  %v1356_v30 = vsel %vm1228_vm11, %v4499_v18, %v2743_v12  ;;  %2972 = vmatpush3.bf16.msra.mxu0 %v3242_v60 }
 0x2cd   : > { %v1357_v6 = vsel %vm1229_vm10, %v4503_v42, %v2744_v28 }
 0x2ce   : > { %v1358_v31 = vsel %vm1230_vm12, %v4509_v15, %v2745_v11  ;;  %v1375_v9 = vpack.c.bf16 %v1357_v6, %v1355_v2 }
 0x2cf   : > { %v1376_v25 = vpack.c.bf16 %v1358_v31, %v1356_v30 }
 0x2d0   : > { %v3368_v33 = vpop.eup %3367 }
 0x2d1   : > { %v3370_v34 = vpop.eup %3369  ;;  %v2746_v36 = vadd.f32 -1.0, %v3368_v33  ;;  %1675 = vmatprep.mubr.bf16.mxu0 %v1376_v25 }
 0x2d2   : > { %v3372_v32 = vpop.eup %3371  ;;  %v2747_v45 = vadd.f32 -1.0, %v3370_v34  ;;  %1676 = vmatmul.mubr.bf16.gmra.mrb[56].mxu0 %v1375_v9 }
 0x2d3   : > { %v3374_v22 = vpop.eup %3373  ;;  %v2748_v29 = vadd.f32 -1.0, %v3372_v32  ;;  %v1359_v18 = vsel %vm1231_vm13, %v4521_v0, %v2746_v36 }
 0x2d4   : > { %v2749_v7 = vadd.f32 -1.0, %v3374_v22  ;;  %v1360_v42 = vsel %vm1232_vm15, %v1197_v61, %v2747_v45 }
 0x2d5   : > { %v1361_v41 = vsel %vm1233_vm14, %v1199_v4, %v2748_v29 }
 0x2d6   : > { %v1362_v37 = vsel %vm1234_vm0, %v1201_v52, %v2749_v7  ;;  %v1377_v23 = vpack.c.bf16 %v1361_v41, %v1359_v18 }
 0x2d7   : > { %v1378_v15 = vpack.c.bf16 %v1362_v37, %v1360_v42 }
 0x2d9   : > { %1685 = vmatprep.mubr.bf16.mxu0 %v1378_v15 }
 0x2da   : > { %1686 = vmatmul.mubr.bf16.gmra.mrb[60].mxu0 %v1377_v23 }
 0x375   : > { %v1617_v0 = vpop.f32.mrb[32].mxu0 }
 0x376   : > { %v1618_v1 = vadd.f32 %v1617_v0, %v4560_v35  ;;  %v1619_v49 = vpop.f32.mrb[33].mxu0 }
 0x377   : > { %v1620_v47 = vadd.f32 %v1619_v49, %v4563_v62  ;;  %v1621_v61 = vpop.f32.mrb[34].mxu0 }
 0x378   : > { %v1728_v38 = vmul.f32 1.442695, %v1618_v1  ;;  %v1622_v57 = vadd.f32 %v1621_v61, %v4560_v35  ;;  %v1623_v43 = vpop.f32.mrb[35].mxu0  ;;  %vm1696_vm1 = vcmp.gt.f32.partialorder %v1618_v1, 0.0 }
 0x379   : > { %v1730_v3 = vmul.f32 1.442695, %v1620_v47  ;;  %v1624_v4 = vadd.f32 %v1623_v43, %v4563_v62  ;;  %vm1697_vm3 = vcmp.gt.f32.partialorder %v1620_v47, 0.0 }
 0x37a   : > { %3375 = vpow2.f32 %v1728_v38  ;;  %v1732_v17 = vmul.f32 1.442695, %v1622_v57  ;;  %vm1698_vm2 = vcmp.gt.f32.partialorder %v1622_v57, 0.0 }
 0x37b   : > { %3377 = vpow2.f32 %v1730_v3  ;;  %v1734_v5 = vmul.f32 1.442695, %v1624_v4  ;;  %vm1699_vm4 = vcmp.gt.f32.partialorder %v1624_v4, 0.0 }
 0x37c   : > { %3379 = vpow2.f32 %v1732_v17 }
 0x37d   : > { %3381 = vpow2.f32 %v1734_v5  ;;  %v1627_v19 = vpop.f32.mrb[36].mxu0 }
 0x37e   : > { %v4570_v44 = vadd.f32 %v1627_v19, %v4560_v35  ;;  %v1629_v52 = vpop.f32.mrb[37].mxu0 }
 0x37f   : > { %v4573_v63 = vadd.f32 %v1629_v52, %v4563_v62  ;;  %v1631_v53 = vpop.f32.mrb[38].mxu0 }
 0x380   : > { %v1736_v8 = vmul.f32 1.442695, %v4570_v44  ;;  %v4577_v59 = vadd.f32 %v1631_v53, %v4560_v35  ;;  %v1633_v14 = vpop.f32.mrb[39].mxu0  ;;  %vm1700_vm5 = vcmp.gt.f32.partialorder %v4570_v44, 0.0 }
 0x381   : > { %v1738_v10 = vmul.f32 1.442695, %v4573_v63  ;;  %v4581_v16 = vadd.f32 %v1633_v14, %v4563_v62  ;;  %vm1701_vm6 = vcmp.gt.f32.partialorder %v4573_v63, 0.0 }
 0x382   : > { %3383 = vpow2.f32 %v1736_v8  ;;  %v1740_v24 = vmul.f32 1.442695, %v4577_v59  ;;  %vm1702_vm8 = vcmp.gt.f32.partialorder %v4577_v59, 0.0 }
 0x383   : > { %3385 = vpow2.f32 %v1738_v10  ;;  %v1742_v50 = vmul.f32 1.442695, %v4581_v16  ;;  %vm1703_vm7 = vcmp.gt.f32.partialorder %v4581_v16, 0.0 }
 0x384   : > { %v3376_v20 = vpop.eup %3375  ;;  %3387 = vpow2.f32 %v1740_v24 }
 0x385   : > { %v3378_v55 = vpop.eup %3377  ;;  %v2782_v27 = vadd.f32 -1.0, %v3376_v20  ;;  %3389 = vpow2.f32 %v1742_v50  ;;  %v1637_v12 = vpop.f32.mrb[40].mxu0 }
 0x386   : > { %v3380_v21 = vpop.eup %3379  ;;  %v4586_v28 = vadd.f32 %v1637_v12, %v4560_v35  ;;  %v1639_v11 = vpop.f32.mrb[41].mxu0  ;;  %v2783_v9 = vadd.f32 -1.0, %v3378_v55 }
 0x387   : > { %v3382_v2 = vpop.eup %3381  ;;  %v2784_v6 = vadd.f32 -1.0, %v3380_v21  ;;  %v4589_v30 = vadd.f32 %v1639_v11, %v4563_v62  ;;  %v1641_v31 = vpop.f32.mrb[42].mxu0  ;;  %v1824_v32 = vsel %vm1696_vm1, %v1618_v1, %v2782_v27 }
 0x388   : > { %v2785_v25 = vadd.f32 -1.0, %v3382_v2  ;;  %v1744_v33 = vmul.f32 1.442695, %v4586_v28  ;;  %v4593_v34 = vadd.f32 %v1641_v31, %v4560_v35  ;;  %v1643_v36 = vpop.f32.mrb[43].mxu0  ;;  %v1825_v37 = vsel %vm1697_vm3, %v1620_v47, %v2783_v9 }
 0x389   : > { %v1826_v45 = vsel %vm1698_vm2, %v1622_v57, %v2784_v6  ;;  %v1746_v22 = vmul.f32 1.442695, %v4589_v30  ;;  %v4597_v29 = vadd.f32 %v1643_v36, %v4563_v62  ;;  %vm1704_vm9 = vcmp.gt.f32.partialorder %v4586_v28, 0.0 }
 0x38a   : > { %v1856_v7 = vpack.c.bf16 %v1826_v45, %v1824_v32  ;;  %3391 = vpow2.f32 %v1744_v33  ;;  %v1748_v18 = vmul.f32 1.442695, %v4593_v34  ;;  %v1827_v23 = vsel %vm1699_vm4, %v1624_v4, %v2785_v25 }
 0x38b   : > { %3393 = vpow2.f32 %v1746_v22  ;;  %v1750_v41 = vmul.f32 1.442695, %v4597_v29  ;;  %v1857_v39 = vpack.c.bf16 %v1827_v23, %v1825_v37  ;;  %vm1705_vm10 = vcmp.gt.f32.partialorder %v4589_v30, 0.0 }
 0x38c   : > { %v3384_v42 = vpop.eup %3383  ;;  %3395 = vpow2.f32 %v1748_v18  ;;  %vm1707_vm11 = vcmp.gt.f32.partialorder %v4597_v29, 0.0  ;;  %vm1706_vm12 = vcmp.gt.f32.partialorder %v4593_v34, 0.0 }
 0x38d   : > { %v3386_v15 = vpop.eup %3385  ;;  %3397 = vpow2.f32 %v1750_v41  ;;  %v1647_v26 = vpop.f32.mrb[44].mxu0  ;;  %v2786_v56 = vadd.f32 -1.0, %v3384_v42  ;;  %2039 = vmatprep.mubr.bf16.mxu1 %v1857_v39 }
 0x38e   : > { %v3388_v46 = vpop.eup %3387  ;;  %v2787_v48 = vadd.f32 -1.0, %v3386_v15  ;;  %v4602_v40 = vadd.f32 %v1647_v26, %v4560_v35  ;;  %v1649_v51 = vpop.f32.mrb[45].mxu0  ;;  %2040 = vmatmul.mubr.bf16.vlgmr.msra.gmra.mrb[32].mxu1 %v1856_v7 }
 0x38f   : > { %v3390_v54 = vpop.eup %3389  ;;  %v4606_v58 = vadd.f32 %v1649_v51, %v4563_v62  ;;  %v1651_v60 = vpop.f32.mrb[46].mxu0  ;;  %v2788_v13 = vadd.f32 -1.0, %v3388_v46  ;;  %v1828_v19 = vsel %vm1700_vm5, %v4570_v44, %v2786_v56 }
 0x390   : > { %v2789_v0 = vadd.f32 -1.0, %v3390_v54  ;;  %v1752_v1 = vmul.f32 1.442695, %v4602_v40  ;;  %v4610_v49 = vadd.f32 %v1651_v60, %v4560_v35  ;;  %v1653_v47 = vpop.f32.mrb[47].mxu0  ;;  %v1829_v43 = vsel %vm1701_vm6, %v4573_v63, %v2787_v48 }
 0x391   : > { %v1754_v61 = vmul.f32 1.442695, %v4606_v58  ;;  %v4616_v38 = vadd.f32 %v1653_v47, %v4563_v62  ;;  %v1830_v52 = vsel %vm1702_vm8, %v4577_v59, %v2788_v13  ;;  %vm1708_vm13 = vcmp.gt.f32.partialorder %v4602_v40, 0.0 }
 0x392   : > { %3399 = vpow2.f32 %v1752_v1  ;;  %v1756_v57 = vmul.f32 1.442695, %v4610_v49  ;;  %v1831_v3 = vsel %vm1703_vm7, %v4581_v16, %v2789_v0  ;;  %v1858_v63 = vpack.c.bf16 %v1830_v52, %v1828_v19 }
 0x393   : > { %3401 = vpow2.f32 %v1754_v61  ;;  %v1758_v4 = vmul.f32 1.442695, %v4616_v38  ;;  %v1859_v17 = vpack.c.bf16 %v1831_v3, %v1829_v43  ;;  %vm1709_vm14 = vcmp.gt.f32.partialorder %v4606_v58, 0.0 }
 0x394   : > { %v3392_v5 = vpop.eup %3391  ;;  %3403 = vpow2.f32 %v1756_v57  ;;  %vm1711_vm15 = vcmp.gt.f32.partialorder %v4616_v38, 0.0  ;;  %vm1710_vm0 = vcmp.gt.f32.partialorder %v4610_v49, 0.0 }
 0x395   : > { %v3394_v53 = vpop.eup %3393  ;;  %3405 = vpow2.f32 %v1758_v4  ;;  %v1657_v8 = vpop.f32.mrb[48].mxu0  ;;  %2047 = vmatprep.mubr.bf16.mxu1 %v1859_v17  ;;  %v2790_v20 = vadd.f32 -1.0, %v3392_v5 }
 0x396   : > { %v3396_v14 = vpop.eup %3395  ;;  %v2791_v10 = vadd.f32 -1.0, %v3394_v53  ;;  %v4628_v16 = vadd.f32 %v1657_v8, %v4560_v35  ;;  %v1659_v24 = vpop.f32.mrb[49].mxu0  ;;  %2048 = vmatmul.mubr.bf16.gmra.mrb[36].mxu1 %v1858_v63 }
 0x397   : > { %v3398_v50 = vpop.eup %3397  ;;  %v4632_v55 = vadd.f32 %v1659_v24, %v4563_v62  ;;  %v1661_v44 = vpop.f32.mrb[50].mxu0  ;;  %v2792_v59 = vadd.f32 -1.0, %v3396_v14  ;;  %v1832_v45 = vsel %vm1704_vm9, %v4586_v28, %v2790_v20 }
 0x398   : > { %v2793_v27 = vadd.f32 -1.0, %v3398_v50  ;;  %v1760_v12 = vmul.f32 1.442695, %v4628_v16  ;;  %v4636_v21 = vadd.f32 %v1661_v44, %v4560_v35  ;;  %v1663_v11 = vpop.f32.mrb[51].mxu0  ;;  %v1833_v9 = vsel %vm1705_vm10, %v4589_v30, %v2791_v10 }
 0x399   : > { %v1762_v2 = vmul.f32 1.442695, %v4632_v55  ;;  %v4642_v6 = vadd.f32 %v1663_v11, %v4563_v62  ;;  %v1834_v22 = vsel %vm1706_vm12, %v4593_v34, %v2792_v59  ;;  %vm1712_vm1 = vcmp.gt.f32.partialorder %v4628_v16, 0.0 }
 0x39a   : > { %3407 = vpow2.f32 %v1760_v12  ;;  %v1764_v31 = vmul.f32 1.442695, %v4636_v21  ;;  %v1835_v25 = vsel %vm1707_vm11, %v4597_v29, %v2793_v27  ;;  %v1860_v30 = vpack.c.bf16 %v1834_v22, %v1832_v45 }
 0x39b   : > { %3409 = vpow2.f32 %v1762_v2  ;;  %v1766_v33 = vmul.f32 1.442695, %v4642_v6  ;;  %v1861_v36 = vpack.c.bf16 %v1835_v25, %v1833_v9  ;;  %vm1713_vm2 = vcmp.gt.f32.partialorder %v4632_v55, 0.0 }
 0x39c   : > { %v3400_v32 = vpop.eup %3399  ;;  %3411 = vpow2.f32 %v1764_v31  ;;  %vm1715_vm3 = vcmp.gt.f32.partialorder %v4642_v6, 0.0  ;;  %vm1714_vm4 = vcmp.gt.f32.partialorder %v4636_v21, 0.0 }
 0x39d   : > { %v3402_v7 = vpop.eup %3401  ;;  %3413 = vpow2.f32 %v1766_v33  ;;  %v1667_v18 = vpop.f32.mrb[52].mxu0  ;;  %2055 = vmatprep.mubr.bf16.mxu1 %v1861_v36  ;;  %v2794_v15 = vadd.f32 -1.0, %v3400_v32 }
 0x39e   : > { %v3404_v29 = vpop.eup %3403  ;;  %v2795_v41 = vadd.f32 -1.0, %v3402_v7  ;;  %v4654_v42 = vadd.f32 %v1667_v18, %v4560_v35  ;;  %v1669_v37 = vpop.f32.mrb[53].mxu0  ;;  %2056 = vmatmul.mubr.bf16.gmra.mrb[40].mxu1 %v1860_v30 }
 0x39f   : > { %v3406_v23 = vpop.eup %3405  ;;  %v4658_v26 = vadd.f32 %v1669_v37, %v4563_v62  ;;  %v1671_v28 = vpop.f32.mrb[54].mxu0  ;;  %v2796_v34 = vadd.f32 -1.0, %v3404_v29  ;;  %v1836_v57 = vsel %vm1708_vm13, %v4602_v40, %v2794_v15 }
 0x3a0   : > { %v2797_v39 = vadd.f32 -1.0, %v3406_v23  ;;  %v1768_v46 = vmul.f32 1.442695, %v4654_v42  ;;  %v4662_v48 = vadd.f32 %v1671_v28, %v4560_v35  ;;  %v1673_v51 = vpop.f32.mrb[55].mxu0  ;;  %v1837_v13 = vsel %vm1709_vm14, %v4606_v58, %v2795_v41 }
 0x3a1   : > { %v1770_v54 = vmul.f32 1.442695, %v4658_v26  ;;  %v4668_v56 = vadd.f32 %v1673_v51, %v4563_v62  ;;  %v1838_v43 = vsel %vm1710_vm0, %v4610_v49, %v2796_v34  ;;  %vm1716_vm5 = vcmp.gt.f32.partialorder %v4654_v42, 0.0 }
 0x3a2   : > { %3415 = vpow2.f32 %v1768_v46  ;;  %v1772_v60 = vmul.f32 1.442695, %v4662_v48  ;;  %v1839_v0 = vsel %vm1711_vm15, %v4616_v38, %v2797_v39  ;;  %v1862_v58 = vpack.c.bf16 %v1838_v43, %v1836_v57 }
 0x3a3   : > { %3417 = vpow2.f32 %v1770_v54  ;;  %v1774_v1 = vmul.f32 1.442695, %v4668_v56  ;;  %v1863_v47 = vpack.c.bf16 %v1839_v0, %v1837_v13  ;;  %vm1717_vm6 = vcmp.gt.f32.partialorder %v4658_v26, 0.0 }
 0x3a4   : > { %v3408_v61 = vpop.eup %3407  ;;  %3419 = vpow2.f32 %v1772_v60  ;;  %vm1719_vm7 = vcmp.gt.f32.partialorder %v4668_v56, 0.0  ;;  %vm1718_vm8 = vcmp.gt.f32.partialorder %v4662_v48, 0.0 }
 0x3a5   : > { %v3410_v3 = vpop.eup %3409  ;;  %3421 = vpow2.f32 %v1774_v1  ;;  %v1677_v4 = vpop.f32.mrb[56].mxu0  ;;  %2063 = vmatprep.mubr.bf16.mxu1 %v1863_v47  ;;  %v2798_v53 = vadd.f32 -1.0, %v3408_v61 }
 0x3a6   : > { %v3412_v38 = vpop.eup %3411  ;;  %v2799_v17 = vadd.f32 -1.0, %v3410_v3  ;;  %v4680_v5 = vadd.f32 %v1677_v4, %v4560_v35  ;;  %v1679_v19 = vpop.f32.mrb[57].mxu0  ;;  %2064 = vmatmul.mubr.bf16.gmra.mrb[44].mxu1 %v1862_v58 }
 0x3a7   : > { %v3414_v52 = vpop.eup %3413  ;;  %v4684_v8 = vadd.f32 %v1679_v19, %v4563_v62  ;;  %v1681_v40 = vpop.f32.mrb[58].mxu0  ;;  %v2800_v49 = vadd.f32 -1.0, %v3412_v38  ;;  %v1840_v31 = vsel %vm1712_vm1, %v4628_v16, %v2798_v53 }
 0x3a8   : > { %v2801_v63 = vadd.f32 -1.0, %v3414_v52  ;;  %v1776_v14 = vmul.f32 1.442695, %v4680_v5  ;;  %v4688_v10 = vadd.f32 %v1681_v40, %v4560_v35  ;;  %v1683_v24 = vpop.f32.mrb[59].mxu0  ;;  %v1841_v59 = vsel %vm1713_vm2, %v4632_v55, %v2799_v17 }
 0x3a9   : > { %v1778_v50 = vmul.f32 1.442695, %v4684_v8  ;;  %v4694_v20 = vadd.f32 %v1683_v24, %v4563_v62  ;;  %v1842_v9 = vsel %vm1714_vm4, %v4636_v21, %v2800_v49  ;;  %vm1720_vm9 = vcmp.gt.f32.partialorder %v4680_v5, 0.0 }
 0x3aa   : > { %3423 = vpow2.f32 %v1776_v14  ;;  %v1780_v44 = vmul.f32 1.442695, %v4688_v10  ;;  %v1843_v27 = vsel %vm1715_vm3, %v4642_v6, %v2801_v63  ;;  %v1864_v55 = vpack.c.bf16 %v1842_v9, %v1840_v31 }
 0x3ab   : > { %3425 = vpow2.f32 %v1778_v50  ;;  %v1782_v12 = vmul.f32 1.442695, %v4694_v20  ;;  %v1865_v11 = vpack.c.bf16 %v1843_v27, %v1841_v59  ;;  %vm1722_vm10 = vcmp.gt.f32.partialorder %v4688_v10, 0.0  ;;  %v3243_v50 = vld [vmem:[%s4853_s9 + $0x20] sm:$0xff]   ;;  %v3246_v59 = vld [vmem:[%s4853_s9 + $0x38] sm:$0xff]  }
 0x3ac   : > { %v3416_v2 = vpop.eup %3415  ;;  %3427 = vpow2.f32 %v1780_v44  ;;  %vm1721_vm11 = vcmp.gt.f32.partialorder %v4684_v8, 0.0  ;;  %vm1723_vm12 = vcmp.gt.f32.partialorder %v4694_v20, 0.0  ;;  %2973 = vmatprep.subr.bf16.mxu0 %v3243_v50  ;;  %v3245_v44 = vld [vmem:[%s4853_s9 + $0x30] sm:$0xff]  }
 0x3ad   : > { %v3418_v25 = vpop.eup %3417  ;;  %3429 = vpow2.f32 %v1782_v12  ;;  %v1687_v33 = vpop.f32.mrb[60].mxu0  ;;  %2071 = vmatprep.mubr.bf16.mxu1 %v1865_v11  ;;  %v2802_v7 = vadd.f32 -1.0, %v3416_v2  ;;  %2974 = vmatpush3.bf16.msra.mxu0 %v3243_v50  ;;  %v4744_v12 = vld [vmem:[#allocation12] ss:$0 sm:$0xff] }
 0x3ae   : > { %v3420_v6 = vpop.eup %3419  ;;  %v2803_v36 = vadd.f32 -1.0, %v3418_v25  ;;  %v4706_v32 = vadd.f32 %v1687_v33, %v4560_v35  ;;  %v1689_v45 = vpop.f32.mrb[61].mxu0  ;;  %2072 = vmatmul.mubr.bf16.gmra.mrb[48].mxu1 %v1864_v55 }
 0x3af   : > { %v3422_v22 = vpop.eup %3421  ;;  %v1690_v18 = vadd.f32 %v1689_v45, %v4563_v62  ;;  %v1691_v16 = vpop.f32.mrb[62].mxu0  ;;  %v2804_v30 = vadd.f32 -1.0, %v3420_v6  ;;  %v1844_v54 = vsel %vm1716_vm5, %v4654_v42, %v2802_v7 }
 0x3b0   : > { %v2805_v21 = vadd.f32 -1.0, %v3422_v22  ;;  %v1784_v29 = vmul.f32 1.442695, %v4706_v32  ;;  %v1692_v41 = vadd.f32 %v1691_v16, %v4560_v35  ;;  %v1693_v37 = vpop.f32.mrb[63].mxu0  ;;  %v1845_v34 = vsel %vm1717_vm6, %v4658_v26, %v2803_v36 }
 0x3b1   : > { %v1786_v23 = vmul.f32 1.442695, %v1690_v18  ;;  %v1694_v15 = vadd.f32 %v1693_v37, %v4563_v62  ;;  %v1846_v60 = vsel %vm1718_vm8, %v4662_v48, %v2804_v30  ;;  %vm1724_vm13 = vcmp.gt.f32.partialorder %v4706_v32, 0.0 }
 0x3b2   : > { %3431 = vpow2.f32 %v1784_v29  ;;  %v1788_v28 = vmul.f32 1.442695, %v1692_v41  ;;  %v1847_v39 = vsel %vm1719_vm7, %v4668_v56, %v2805_v21  ;;  %v1866_v26 = vpack.c.bf16 %v1846_v60, %v1844_v54 }
 0x3b3   : > { %3433 = vpow2.f32 %v1786_v23  ;;  %v1790_v46 = vmul.f32 1.442695, %v1694_v15  ;;  %v1867_v51 = vpack.c.bf16 %v1847_v39, %v1845_v34  ;;  %vm1726_vm14 = vcmp.gt.f32.partialorder %v1692_v41, 0.0 }
 0x3b4   : > { %v3424_v35 = vpop.eup %3423  ;;  %3435 = vpow2.f32 %v1788_v28  ;;  %vm1725_vm15 = vcmp.gt.f32.partialorder %v1690_v18, 0.0  ;;  %vm1727_vm0 = vcmp.gt.f32.partialorder %v1694_v15, 0.0 }
 0x3b5   : > { %v3426_v62 = vpop.eup %3425  ;;  %v2806_v13 = vadd.f32 -1.0, %v3424_v35  ;;  %3437 = vpow2.f32 %v1790_v46  ;;  %2079 = vmatprep.mubr.bf16.mxu1 %v1867_v51 }
 0x3b6   : > { %v3428_v0 = vpop.eup %3427  ;;  %v2807_v56 = vadd.f32 -1.0, %v3426_v62  ;;  %2080 = vmatmul.mubr.bf16.gmra.mrb[52].mxu1 %v1866_v26 }
 0x3b7   : > { %v3430_v1 = vpop.eup %3429  ;;  %v2808_v47 = vadd.f32 -1.0, %v3428_v0  ;;  %v1848_v42 = vsel %vm1720_vm9, %v4680_v5, %v2806_v13 }
 0x3b8   : > { %v2809_v61 = vadd.f32 -1.0, %v3430_v1  ;;  %v1849_v57 = vsel %vm1721_vm11, %v4684_v8, %v2807_v56 }
 0x3b9   : > { %v1850_v48 = vsel %vm1722_vm10, %v4688_v10, %v2808_v47 }
 0x3ba   : > { %v1851_v43 = vsel %vm1723_vm12, %v4694_v20, %v2809_v61  ;;  %v1868_v3 = vpack.c.bf16 %v1850_v48, %v1848_v42  ;;  %v3244_v20 = vld [vmem:[%s4853_s9 + $0x28] sm:$0xff]  }
 0x3bb   : > { %v1869_v4 = vpack.c.bf16 %v1851_v43, %v1849_v57  ;;  %2975 = vmatprep.subr.bf16.mxu0 %v3244_v20 }
 0x3bc   : > { %v3432_v58 = vpop.eup %3431  ;;  %2976 = vmatpush3.bf16.msra.mxu0 %v3244_v20 }
 0x3bd   : > { %v3434_v38 = vpop.eup %3433  ;;  %v2810_v17 = vadd.f32 -1.0, %v3432_v58  ;;  %2087 = vmatprep.mubr.bf16.mxu1 %v1869_v4  ;;  %2977 = vmatprep.subr.bf16.mxu0 %v3245_v44 }
 0x3be   : > { %v3436_v19 = vpop.eup %3435  ;;  %v2811_v52 = vadd.f32 -1.0, %v3434_v38  ;;  %2088 = vmatmul.mubr.bf16.gmra.mrb[56].mxu1 %v1868_v3 }
 0x3bf   : > { %v3438_v53 = vpop.eup %3437  ;;  %v2812_v40 = vadd.f32 -1.0, %v3436_v19  ;;  %v1852_v8 = vsel %vm1724_vm13, %v4706_v32, %v2810_v17 }
 0x3c0   : > { %v2813_v5 = vadd.f32 -1.0, %v3438_v53  ;;  %v1853_v63 = vsel %vm1725_vm15, %v1690_v18, %v2811_v52  ;;  %2978 = vmatpush3.bf16.msra.mxu0 %v3245_v44 }
 0x3c1   : > { %v1854_v49 = vsel %vm1726_vm14, %v1692_v41, %v2812_v40  ;;  %2979 = vmatprep.subr.bf16.mxu0 %v3246_v59 }
 0x3c2   : > { %v1855_v14 = vsel %vm1727_vm0, %v1694_v15, %v2813_v5  ;;  %v1870_v10 = vpack.c.bf16 %v1854_v49, %v1852_v8 }
 0x3c3   : > { %v1871_v24 = vpack.c.bf16 %v1855_v14, %v1853_v63 }
 0x3c4   : > { %2980 = vmatpush3.bf16.msra.mxu0 %v3246_v59 }
 0x3c5   : > { %2095 = vmatprep.mubr.bf16.mxu1 %v1871_v24 }
 0x3c6   : > { %2096 = vmatmul.mubr.bf16.gmra.mrb[60].mxu1 %v1870_v10 }
 0x461   : > { %v2892_v27 = vpop.f32.mrb[32].mxu1 }
 0x462   : > { %v2893_v11 = vpop.f32.mrb[33].mxu1 }
 0x463   : > { %v2894_v2 = vadd.f32 %v2893_v11, %v2892_v27  ;;  %v2895_v31 = vpop.f32.mrb[34].mxu1 }
 0x464   : > { %v2896_v9 = vpop.f32.mrb[35].mxu1 }
 0x465   : > { %v2042_v25 = vadd.f32 %v2894_v2, %v4744_v12  ;;  %v2897_v33 = vadd.f32 %v2896_v9, %v2895_v31 }
 0x467   : > { %v2120_v55 = vmul.f32 1.442695, %v2042_v25  ;;  %v2045_v6 = vadd.f32 %v2897_v33, %v4744_v12  ;;  %vm2104_vm1 = vcmp.gt.f32.partialorder %v2042_v25, 0.0 }
 0x469   : > { %3439 = vpow2.f32 %v2120_v55  ;;  %v2122_v36 = vmul.f32 1.442695, %v2045_v6  ;;  %v2898_v32 = vpop.f32.mrb[36].mxu1  ;;  %vm2105_vm2 = vcmp.gt.f32.partialorder %v2045_v6, 0.0 }
 0x46a   : > { %v2899_v45 = vpop.f32.mrb[37].mxu1 }
 0x46b   : > { %3441 = vpow2.f32 %v2122_v36  ;;  %v2900_v22 = vadd.f32 %v2899_v45, %v2898_v32  ;;  %v2901_v7 = vpop.f32.mrb[38].mxu1 }
 0x46c   : > { %v2902_v18 = vpop.f32.mrb[39].mxu1 }
 0x46d   : > { %v2050_v16 = vadd.f32 %v2900_v22, %v4744_v12  ;;  %v2903_v30 = vadd.f32 %v2902_v18, %v2901_v7 }
 0x46f   : > { %v2124_v21 = vmul.f32 1.442695, %v2050_v16  ;;  %v2053_v29 = vadd.f32 %v2903_v30, %v4744_v12  ;;  %vm2106_vm3 = vcmp.gt.f32.partialorder %v2050_v16, 0.0 }
 0x471   : > { %3443 = vpow2.f32 %v2124_v21  ;;  %v2126_v41 = vmul.f32 1.442695, %v2053_v29  ;;  %v2904_v37 = vpop.f32.mrb[40].mxu1  ;;  %vm2107_vm4 = vcmp.gt.f32.partialorder %v2053_v29, 0.0 }
 0x472   : > { %v2905_v23 = vpop.f32.mrb[41].mxu1 }
 0x473   : > { %v3440_v15 = vpop.eup %3439  ;;  %3445 = vpow2.f32 %v2126_v41  ;;  %v2906_v28 = vadd.f32 %v2905_v23, %v2904_v37  ;;  %v2907_v34 = vpop.f32.mrb[42].mxu1 }
 0x474   : > { %v2908_v39 = vpop.f32.mrb[43].mxu1  ;;  %v2831_v46 = vadd.f32 -1.0, %v3440_v15 }
 0x475   : > { %v3442_v51 = vpop.eup %3441  ;;  %v2058_v35 = vadd.f32 %v2906_v28, %v4744_v12  ;;  %v2909_v54 = vadd.f32 %v2908_v39, %v2907_v34 }
 0x476   : > { %v2832_v60 = vadd.f32 -1.0, %v3442_v51  ;;  %v2168_v26 = vsel %vm2104_vm1, %v2042_v25, %v2831_v46  ;;  %vm3767_vm1 = vmmov 0  }
 0x477   : > { %v2128_v62 = vmul.f32 1.442695, %v2058_v35  ;;  %v2061_v13 = vadd.f32 %v2909_v54, %v4744_v12  ;;  %vm2108_vm5 = vcmp.gt.f32.partialorder %v2058_v35, 0.0 }
 0x478   : > { %v2169_v0 = vsel %vm2105_vm2, %v2045_v6, %v2832_v60 }
 0x479   : > { %3447 = vpow2.f32 %v2128_v62  ;;  %v2130_v56 = vmul.f32 1.442695, %v2061_v13  ;;  %v2910_v1 = vpop.f32.mrb[44].mxu1  ;;  %v2184_v47 = vpack.c.bf16 %v2169_v0, %v2168_v26  ;;  %vm2109_vm6 = vcmp.gt.f32.partialorder %v2061_v13, 0.0 }
 0x47a   : > { %v2911_v61 = vpop.f32.mrb[45].mxu1 }
 0x47b   : > { %v3444_v42 = vpop.eup %3443  ;;  %3449 = vpow2.f32 %v2130_v56  ;;  %v2912_v48 = vadd.f32 %v2911_v61, %v2910_v1  ;;  %v2913_v57 = vpop.f32.mrb[46].mxu1  ;;  %2981 = vmatprep.mubr.bf16.mxu0 %v2184_v47 }
 0x47c   : > { %v2833_v43 = vadd.f32 -1.0, %v3444_v42  ;;  %v2914_v3 = vpop.f32.mrb[47].mxu1 }
 0x47d   : > { %v3446_v4 = vpop.eup %3445  ;;  %v2066_v58 = vadd.f32 %v2912_v48, %v4744_v12  ;;  %v2915_v38 = vadd.f32 %v2914_v3, %v2913_v57 }
 0x47e   : > { %v2834_v17 = vadd.f32 -1.0, %v3446_v4  ;;  %v2170_v53 = vsel %vm2106_vm3, %v2050_v16, %v2833_v43 }
 0x47f   : > { %v2132_v19 = vmul.f32 1.442695, %v2066_v58  ;;  %v2069_v52 = vadd.f32 %v2915_v38, %v4744_v12  ;;  %vm2110_vm7 = vcmp.gt.f32.partialorder %v2066_v58, 0.0 }
 0x480   : > { %v2171_v40 = vsel %vm2107_vm4, %v2053_v29, %v2834_v17 }
 0x481   : > { %v2185_v5 = vpack.c.bf16 %v2171_v40, %v2170_v53  ;;  %3451 = vpow2.f32 %v2132_v19  ;;  %v2134_v8 = vmul.f32 1.442695, %v2069_v52  ;;  %v2916_v49 = vpop.f32.mrb[48].mxu1  ;;  %vm2111_vm8 = vcmp.gt.f32.partialorder %v2069_v52, 0.0 }
 0x482   : > { %v2917_v63 = vpop.f32.mrb[49].mxu1 }
 0x483   : > { %v3448_v14 = vpop.eup %3447  ;;  %3453 = vpow2.f32 %v2134_v8  ;;  %v2918_v10 = vadd.f32 %v2917_v63, %v2916_v49  ;;  %v2919_v24 = vpop.f32.mrb[50].mxu1  ;;  %2982 = vmatmul.mubr.bf16.vlgmr.msra.gmra.mrb[64].mxu0 %v2185_v5 }
 0x484   : > { %v2920_v50 = vpop.f32.mrb[51].mxu1  ;;  %v2835_v20 = vadd.f32 -1.0, %v3448_v14 }
 0x485   : > { %v3450_v44 = vpop.eup %3449  ;;  %v2074_v59 = vadd.f32 %v2918_v10, %v4744_v12  ;;  %v2921_v27 = vadd.f32 %v2920_v50, %v2919_v24 }
 0x486   : > { %v2836_v11 = vadd.f32 -1.0, %v3450_v44  ;;  %v2172_v9 = vsel %vm2108_vm5, %v2058_v35, %v2835_v20 }
 0x487   : > { %v2136_v2 = vmul.f32 1.442695, %v2074_v59  ;;  %v2077_v31 = vadd.f32 %v2921_v27, %v4744_v12  ;;  %vm2112_vm9 = vcmp.gt.f32.partialorder %v2074_v59, 0.0 }
 0x488   : > { %v2173_v25 = vsel %vm2109_vm6, %v2061_v13, %v2836_v11 }
 0x489   : > { %3455 = vpow2.f32 %v2136_v2  ;;  %v2138_v33 = vmul.f32 1.442695, %v2077_v31  ;;  %v2922_v55 = vpop.f32.mrb[52].mxu1  ;;  %v2186_v6 = vpack.c.bf16 %v2173_v25, %v2172_v9  ;;  %vm2113_vm10 = vcmp.gt.f32.partialorder %v2077_v31, 0.0 }
 0x48a   : > { %v2923_v36 = vpop.f32.mrb[53].mxu1 }
 0x48b   : > { %v3452_v32 = vpop.eup %3451  ;;  %3457 = vpow2.f32 %v2138_v33  ;;  %v2924_v45 = vadd.f32 %v2923_v36, %v2922_v55  ;;  %v2925_v22 = vpop.f32.mrb[54].mxu1  ;;  %2985 = vmatprep.mubr.bf16.mxu0 %v2186_v6  ;;  %v3766_v36 = vmov 0.0  }
 0x48c   : > { %v2926_v7 = vpop.f32.mrb[55].mxu1  ;;  %v2837_v18 = vadd.f32 -1.0, %v3452_v32  ;;  %2997 = vmatprep.subr.bf16.mxu1 %v3766_v36  ;;  %3013 = vmatprep.mubr.msk.bf16.mxu1 %vm3767_vm1, %v3766_v36  ;;  %v4767_v32 = vld [vmem:[%s4854_s10] ss:$0 sm:$0xff] }
 0x48d   : > { %v3454_v16 = vpop.eup %3453  ;;  %v2082_v30 = vadd.f32 %v2924_v45, %v4744_v12  ;;  %v2927_v21 = vadd.f32 %v2926_v7, %v2925_v22 }
 0x48e   : > { %v2838_v29 = vadd.f32 -1.0, %v3454_v16  ;;  %v2174_v23 = vsel %vm2110_vm7, %v2066_v58, %v2837_v18 }
 0x48f   : > { %v2140_v41 = vmul.f32 1.442695, %v2082_v30  ;;  %v2085_v37 = vadd.f32 %v2927_v21, %v4744_v12  ;;  %vm2114_vm11 = vcmp.gt.f32.partialorder %v2082_v30, 0.0 }
 0x490   : > { %v2175_v15 = vsel %vm2111_vm8, %v2069_v52, %v2838_v29 }
 0x491   : > { %3459 = vpow2.f32 %v2140_v41  ;;  %v2142_v28 = vmul.f32 1.442695, %v2085_v37  ;;  %v2928_v34 = vpop.f32.mrb[56].mxu1  ;;  %v2187_v39 = vpack.c.bf16 %v2175_v15, %v2174_v23  ;;  %vm2115_vm12 = vcmp.gt.f32.partialorder %v2085_v37, 0.0 }
 0x492   : > { %v2929_v46 = vpop.f32.mrb[57].mxu1 }
 0x493   : > { %v3456_v51 = vpop.eup %3455  ;;  %3461 = vpow2.f32 %v2142_v28  ;;  %v2930_v35 = vadd.f32 %v2929_v46, %v2928_v34  ;;  %v2931_v54 = vpop.f32.mrb[58].mxu1  ;;  %2986 = vmatmul.mubr.bf16.gmra.mrb[68].mxu0 %v2187_v39 }
 0x494   : > { %v2932_v60 = vpop.f32.mrb[59].mxu1  ;;  %v2839_v62 = vadd.f32 -1.0, %v3456_v51 }
 0x495   : > { %v3458_v13 = vpop.eup %3457  ;;  %v2090_v26 = vadd.f32 %v2930_v35, %v4744_v12  ;;  %v2933_v0 = vadd.f32 %v2932_v60, %v2931_v54 }
 0x496   : > { %v2840_v56 = vadd.f32 -1.0, %v3458_v13  ;;  %v2176_v61 = vsel %vm2112_vm9, %v2074_v59, %v2839_v62 }
 0x497   : > { %v2144_v1 = vmul.f32 1.442695, %v2090_v26  ;;  %v2093_v47 = vadd.f32 %v2933_v0, %v4744_v12  ;;  %vm2116_vm13 = vcmp.gt.f32.partialorder %v2090_v26, 0.0 }
 0x498   : > { %v2177_v42 = vsel %vm2113_vm10, %v2077_v31, %v2840_v56 }
 0x499   : > { %3463 = vpow2.f32 %v2144_v1  ;;  %v2146_v48 = vmul.f32 1.442695, %v2093_v47  ;;  %v2934_v57 = vpop.f32.mrb[60].mxu1  ;;  %v2188_v43 = vpack.c.bf16 %v2177_v42, %v2176_v61  ;;  %vm2117_vm14 = vcmp.gt.f32.partialorder %v2093_v47, 0.0 }
 0x49a   : > { %v2935_v3 = vpop.f32.mrb[61].mxu1 }
 0x49b   : > { %v3460_v4 = vpop.eup %3459  ;;  %3465 = vpow2.f32 %v2146_v48  ;;  %v2936_v58 = vadd.f32 %v2935_v3, %v2934_v57  ;;  %v2937_v38 = vpop.f32.mrb[62].mxu1  ;;  %2989 = vmatprep.mubr.bf16.mxu0 %v2188_v43 }
 0x49c   : > { %v2938_v17 = vpop.f32.mrb[63].mxu1  ;;  %v2841_v19 = vadd.f32 -1.0, %v3460_v4 }
 0x49d   : > { %v3462_v52 = vpop.eup %3461  ;;  %v2098_v53 = vadd.f32 %v2936_v58, %v4744_v12  ;;  %v2939_v40 = vadd.f32 %v2938_v17, %v2937_v38 }
 0x49e   : > { %v2842_v5 = vadd.f32 -1.0, %v3462_v52  ;;  %v2178_v63 = vsel %vm2114_vm11, %v2082_v30, %v2841_v19 }
 0x49f   : > { %v2148_v8 = vmul.f32 1.442695, %v2098_v53  ;;  %v2101_v49 = vadd.f32 %v2939_v40, %v4744_v12  ;;  %vm2118_vm15 = vcmp.gt.f32.partialorder %v2098_v53, 0.0 }
 0x4a0   : > { %v2179_v14 = vsel %vm2115_vm12, %v2085_v37, %v2842_v5 }
 0x4a1   : > { %3467 = vpow2.f32 %v2148_v8  ;;  %v2150_v10 = vmul.f32 1.442695, %v2101_v49  ;;  %v2189_v24 = vpack.c.bf16 %v2179_v14, %v2178_v63  ;;  %vm2119_vm0 = vcmp.gt.f32.partialorder %v2101_v49, 0.0 }
 0x4a3   : > { %v3464_v50 = vpop.eup %3463  ;;  %3469 = vpow2.f32 %v2150_v10  ;;  %2990 = vmatmul.mubr.bf16.gmra.mrb[72].mxu0 %v2189_v24 }
 0x4a4   : > { %v2843_v20 = vadd.f32 -1.0, %v3464_v50 }
 0x4a5   : > { %v3466_v44 = vpop.eup %3465 }
 0x4a6   : > { %v2844_v59 = vadd.f32 -1.0, %v3466_v44  ;;  %v2180_v27 = vsel %vm2116_vm13, %v2090_v26, %v2843_v20 }
 0x4a8   : > { %v2181_v11 = vsel %vm2117_vm14, %v2093_v47, %v2844_v59 }
 0x4a9   : > { %v2190_v2 = vpack.c.bf16 %v2181_v11, %v2180_v27 }
 0x4ab   : > { %v3468_v31 = vpop.eup %3467  ;;  %2993 = vmatprep.mubr.bf16.mxu0 %v2190_v2 }
 0x4ac   : > { %v2845_v9 = vadd.f32 -1.0, %v3468_v31 }
 0x4ad   : > { %v3470_v12 = vpop.eup %3469 }
 0x4ae   : > { %v2846_v25 = vadd.f32 -1.0, %v3470_v12  ;;  %v2182_v33 = vsel %vm2118_vm15, %v2098_v53, %v2845_v9 }
 0x4b0   : > { %v2183_v55 = vsel %vm2119_vm0, %v2101_v49, %v2846_v25 }
 0x4b1   : > { %v2191_v6 = vpack.c.bf16 %v2183_v55, %v2182_v33 }
 0x4b3   : > { %2994 = vmatmul.mubr.bf16.gmra.mrb[76].mxu0 %v2191_v6 }
 0x556   : > { %v2983_v45 = vpop.f32.mrb[64].mxu0 }
 0x557   : > { %v2306_v22 = vadd.f32 %v2983_v45, %v4767_v32  ;;  %v2297_v7 = vpop.f32.mrb[65].mxu0 }
 0x558   : > { %v2298_v18 = vadd.f32 %v4767_v32, %v2297_v7  ;;  %v2984_v16 = vpop.f32.mrb[66].mxu0 }
 0x559   : > { %v2380_v30 = vmul.f32 1.442695, %v2306_v22  ;;  %v2309_v21 = vadd.f32 %v2984_v16, %v4767_v32  ;;  %v2300_v29 = vpop.f32.mrb[67].mxu0  ;;  %vm2362_vm2 = vcmp.gt.f32.partialorder %v2306_v22, 0.0 }
 0x55a   : > { %v2376_v41 = vmul.f32 1.442695, %v2298_v18  ;;  %v2301_v37 = vadd.f32 %v4767_v32, %v2300_v29  ;;  %vm2360_vm3 = vcmp.gt.f32.partialorder %v2298_v18, 0.0 }
 0x55b   : > { %3471 = vpow2.f32 %v2380_v30  ;;  %v2382_v23 = vmul.f32 1.442695, %v2309_v21  ;;  %vm2363_vm4 = vcmp.gt.f32.partialorder %v2309_v21, 0.0 }
 0x55c   : > { %3473 = vpow2.f32 %v2376_v41  ;;  %v2378_v15 = vmul.f32 1.442695, %v2301_v37  ;;  %vm2361_vm5 = vcmp.gt.f32.partialorder %v2301_v37, 0.0 }
 0x55d   : > { %3475 = vpow2.f32 %v2382_v23 }
 0x55e   : > { %3477 = vpow2.f32 %v2378_v15 }
 0x565   : > { %v3472_v28 = vpop.eup %3471 }
 0x566   : > { %v3474_v34 = vpop.eup %3473  ;;  %v2858_v39 = vadd.f32 -1.0, %v3472_v28  ;;  %v2987_v46 = vpop.f32.mrb[68].mxu0 }
 0x567   : > { %v3476_v51 = vpop.eup %3475  ;;  %v2856_v35 = vadd.f32 -1.0, %v3474_v34  ;;  %v2322_v54 = vadd.f32 %v2987_v46, %v4767_v32  ;;  %v2313_v60 = vpop.f32.mrb[69].mxu0 }
 0x568   : > { %v3478_v62 = vpop.eup %3477  ;;  %v2859_v13 = vadd.f32 -1.0, %v3476_v51  ;;  %v2314_v26 = vadd.f32 %v4767_v32, %v2313_v60  ;;  %v2988_v0 = vpop.f32.mrb[70].mxu0  ;;  %v2426_v56 = vsel %vm2362_vm2, %v2306_v22, %v2858_v39 }
 0x569   : > { %v2857_v1 = vadd.f32 -1.0, %v3478_v62  ;;  %v2388_v47 = vmul.f32 1.442695, %v2322_v54  ;;  %v2316_v61 = vpop.f32.mrb[71].mxu0  ;;  %v2424_v42 = vsel %vm2360_vm3, %v2298_v18, %v2856_v35  ;;  %v2325_v43 = vadd.f32 %v2988_v0, %v4767_v32 }
 0x56a   : > { %v2427_v48 = vsel %vm2363_vm4, %v2309_v21, %v2859_v13  ;;  %v2384_v57 = vmul.f32 1.442695, %v2314_v26  ;;  %v2317_v58 = vadd.f32 %v4767_v32, %v2316_v61  ;;  %vm2366_vm6 = vcmp.gt.f32.partialorder %v2322_v54, 0.0 }
 0x56b   : > { %v2441_v3 = vpack.c.bf16 %v2427_v48, %v2426_v56  ;;  %v2425_v4 = vsel %vm2361_vm5, %v2301_v37, %v2857_v1  ;;  %3479 = vpow2.f32 %v2388_v47  ;;  %v2390_v17 = vmul.f32 1.442695, %v2325_v43 }
 0x56c   : > { %v2440_v38 = vpack.c.bf16 %v2425_v4, %v2424_v42  ;;  %3481 = vpow2.f32 %v2384_v57  ;;  %v2386_v19 = vmul.f32 1.442695, %v2317_v58  ;;  %vm2364_vm7 = vcmp.gt.f32.partialorder %v2314_v26, 0.0 }
 0x56d   : > { %3483 = vpow2.f32 %v2390_v17  ;;  %vm2367_vm8 = vcmp.gt.f32.partialorder %v2325_v43, 0.0  ;;  %vm2365_vm9 = vcmp.gt.f32.partialorder %v2317_v58, 0.0 }
 0x56e   : > { %2998 = vmatpush3.bf16.xpose.msra.mxu1 %v2440_v38  ;;  %3485 = vpow2.f32 %v2386_v19 }
 0x56f   : > { %2999 = vmatprep.subr.bf16.mxu1 %v3766_v36 }
 0x575   : > { %v3480_v52 = vpop.eup %3479 }
 0x576   : > { %v3482_v53 = vpop.eup %3481  ;;  %v2991_v40 = vpop.f32.mrb[72].mxu0  ;;  %3000 = vmatpush3.bf16.xpose.msra.mxu1 %v2441_v3  ;;  %v2862_v5 = vadd.f32 -1.0, %v3480_v52 }
 0x577   : > { %v2338_v8 = vadd.f32 %v2991_v40, %v4767_v32  ;;  %v2329_v49 = vpop.f32.mrb[73].mxu0  ;;  %3001 = vmatprep.subr.bf16.mxu1 %v3766_v36  ;;  %v3484_v63 = vpop.eup %3483  ;;  %v2860_v14 = vadd.f32 -1.0, %v3482_v53 }
 0x578   : > { %v2330_v10 = vadd.f32 %v4767_v32, %v2329_v49  ;;  %v2992_v24 = vpop.f32.mrb[74].mxu0  ;;  %v3486_v50 = vpop.eup %3485  ;;  %v2863_v20 = vadd.f32 -1.0, %v3484_v63  ;;  %v2430_v31 = vsel %vm2366_vm6, %v2322_v54, %v2862_v5  ;;  %v2448_v5 = vld [vmem:[%s4855_s11] sm:$0x1] }
 0x579   : > { %v2396_v44 = vmul.f32 1.442695, %v2338_v8  ;;  %v2332_v59 = vpop.f32.mrb[75].mxu0  ;;  %v2861_v27 = vadd.f32 -1.0, %v3486_v50  ;;  %v2341_v2 = vadd.f32 %v2992_v24, %v4767_v32  ;;  %v2428_v25 = vsel %vm2364_vm7, %v2314_v26, %v2860_v14 }
 0x57a   : > { %v2392_v11 = vmul.f32 1.442695, %v2330_v10  ;;  %v2431_v9 = vsel %vm2367_vm8, %v2325_v43, %v2863_v20  ;;  %v2333_v12 = vadd.f32 %v4767_v32, %v2332_v59  ;;  %vm2370_vm10 = vcmp.gt.f32.partialorder %v2338_v8, 0.0 }
 0x57b   : > { %3487 = vpow2.f32 %v2396_v44  ;;  %v2443_v33 = vpack.c.bf16 %v2431_v9, %v2430_v31  ;;  %v2429_v55 = vsel %vm2365_vm9, %v2317_v58, %v2861_v27  ;;  %v2398_v45 = vmul.f32 1.442695, %v2341_v2 }
 0x57c   : > { %3489 = vpow2.f32 %v2392_v11  ;;  %v2442_v6 = vpack.c.bf16 %v2429_v55, %v2428_v25  ;;  %v2394_v22 = vmul.f32 1.442695, %v2333_v12  ;;  %vm2368_vm11 = vcmp.gt.f32.partialorder %v2330_v10, 0.0 }
 0x57d   : > { %3491 = vpow2.f32 %v2398_v45  ;;  %vm2371_vm12 = vcmp.gt.f32.partialorder %v2341_v2, 0.0  ;;  %vm2369_vm13 = vcmp.gt.f32.partialorder %v2333_v12, 0.0 }
 0x57e   : > { %3002 = vmatpush3.bf16.xpose.msra.mxu1 %v2442_v6  ;;  %3493 = vpow2.f32 %v2394_v22 }
 0x57f   : > { %3003 = vmatprep.subr.bf16.mxu1 %v3766_v36 }
 0x585   : > { %v3488_v7 = vpop.eup %3487 }
 0x586   : > { %v3490_v18 = vpop.eup %3489  ;;  %v2995_v16 = vpop.f32.mrb[76].mxu0  ;;  %3004 = vmatpush3.bf16.xpose.msra.mxu1 %v2443_v33  ;;  %v2866_v29 = vadd.f32 -1.0, %v3488_v7 }
 0x587   : > { %v2354_v30 = vadd.f32 %v2995_v16, %v4767_v32  ;;  %v2345_v21 = vpop.f32.mrb[77].mxu0  ;;  %3005 = vmatprep.subr.bf16.mxu1 %v3766_v36  ;;  %v3492_v23 = vpop.eup %3491  ;;  %v2864_v15 = vadd.f32 -1.0, %v3490_v18 }
 0x588   : > { %v2346_v41 = vadd.f32 %v4767_v32, %v2345_v21  ;;  %v2996_v37 = vpop.f32.mrb[78].mxu0  ;;  %v3494_v46 = vpop.eup %3493  ;;  %v2867_v51 = vadd.f32 -1.0, %v3492_v23  ;;  %v2434_v13 = vsel %vm2370_vm10, %v2338_v8, %v2866_v29  ;;  %v2450_v8 = vstv %s2449_s25 }
 0x589   : > { %v2404_v28 = vmul.f32 1.442695, %v2354_v30  ;;  %v2357_v34 = vadd.f32 %v2996_v37, %v4767_v32  ;;  %v2348_v39 = vpop.f32.mrb[79].mxu0  ;;  %v2865_v60 = vadd.f32 -1.0, %v3494_v46  ;;  %v2432_v56 = vsel %vm2368_vm11, %v2330_v10, %v2864_v15 }
 0x58a   : > { %v2400_v35 = vmul.f32 1.442695, %v2346_v41  ;;  %v2349_v54 = vadd.f32 %v4767_v32, %v2348_v39  ;;  %v2435_v26 = vsel %vm2371_vm12, %v2341_v2, %v2867_v51  ;;  %vm2374_vm14 = vcmp.gt.f32.partialorder %v2354_v30, 0.0 }
 0x58b   : > { %3495 = vpow2.f32 %v2404_v28  ;;  %v2406_v62 = vmul.f32 1.442695, %v2357_v34  ;;  %v2445_v1 = vpack.c.bf16 %v2435_v26, %v2434_v13  ;;  %v2433_v47 = vsel %vm2369_vm13, %v2333_v12, %v2865_v60 }
 0x58c   : > { %3497 = vpow2.f32 %v2400_v35  ;;  %v2402_v0 = vmul.f32 1.442695, %v2349_v54  ;;  %v2444_v61 = vpack.c.bf16 %v2433_v47, %v2432_v56  ;;  %vm2375_vm15 = vcmp.gt.f32.partialorder %v2357_v34, 0.0 }
 0x58d   : > { %3499 = vpow2.f32 %v2406_v62  ;;  %vm2372_vm0 = vcmp.gt.f32.partialorder %v2346_v41, 0.0  ;;  %vm2373_vm1 = vcmp.gt.f32.partialorder %v2349_v54, 0.0 }
 0x58e   : > { %3501 = vpow2.f32 %v2402_v0  ;;  %3006 = vmatpush3.bf16.xpose.msra.mxu1 %v2444_v61 }
 0x58f   : > { %3007 = vmatprep.subr.bf16.mxu1 %v3766_v36 }
 0x595   : > { %v3496_v32 = vpop.eup %3495 }
 0x596   : > { %v3498_v42 = vpop.eup %3497  ;;  %v2870_v48 = vadd.f32 -1.0, %v3496_v32  ;;  %3008 = vmatpush3.bf16.xpose.msra.mxu1 %v2445_v1 }
 0x597   : > { %v3500_v57 = vpop.eup %3499  ;;  %v2868_v43 = vadd.f32 -1.0, %v3498_v42  ;;  %3009 = vmatprep.subr.bf16.mxu1 %v3766_v36 }
 0x598   : > { %v3502_v3 = vpop.eup %3501  ;;  %v2871_v4 = vadd.f32 -1.0, %v3500_v57  ;;  %v2438_v38 = vsel %vm2374_vm14, %v2354_v30, %v2870_v48 }
 0x599   : > { %v2869_v58 = vadd.f32 -1.0, %v3502_v3  ;;  %v2436_v19 = vsel %vm2372_vm0, %v2346_v41, %v2868_v43 }
 0x59a   : > { %v2439_v17 = vsel %vm2375_vm15, %v2357_v34, %v2871_v4 }
 0x59b   : > { %v2447_v52 = vpack.c.bf16 %v2439_v17, %v2438_v38  ;;  %v2437_v53 = vsel %vm2373_vm1, %v2349_v54, %v2869_v58 }
 0x59c   : > { %v2446_v40 = vpack.c.bf16 %v2437_v53, %v2436_v19 }
 0x59e   : > { %3010 = vmatpush3.bf16.xpose.msra.mxu1 %v2446_v40 }
 0x59f   : > { %3011 = vmatprep.subr.bf16.mxu1 %v3766_v36 }
 0x5a6   : > { %3012 = vmatpush3.bf16.xpose.msra.mxu1 %v2447_v52 }
 0x5ad   : > { %3014 = vmatmul.mubr.bf16.vlgmr.msra.gmra.mrb[64].mxu1 %v2448_v5 }
 0x680   : > { %v2485_v49 = vpop.f32.mrb[64].mxu1 }
 0x681   : > { %v2486_v63 = vadd.f32 %v2485_v49, %v2450_v8  ;;  %v3015_v14 = vpop.f32.mrb[65].mxu1 }
 0x682   : > { %v2488_v10 = vpop.f32.mrb[66].mxu1 }
 0x683   : > { %v2872_v24 = vmul.f32 -1.442695, %v2486_v63  ;;  %v3016_v50 = vpop.f32.mrb[67].mxu1 }
 0x685   : > { %3503 = vpow2.f32 %v2872_v24 }
 0x68f   : > { %v3504_v20 = vpop.eup %3503 }
 0x690   : > { %v2494_v36 = vadd.f32 1.0, %v3504_v20 }
 0x692   : > { %3505 = vrcp.f32 %v2494_v36 }
 0x69c   : > { %v3506_v44 = vpop.eup %3505 }
 0x69d   : > { %2497 = vst [vmem:[%s516_s26] sm:$0x1] %v3506_v44 }
 0x69e   : > { %3688 = shalt.err (!%p3685_p6)
}
 0x69f   : > { %s3689_s21 = scalar_lea.hbm %s4802_s16, 16  ;;  %s3693_s17 = scalar_lea.hbm %s4897_s12, 32 }
 0x6a0   : > { %p3690_p5 = scmp.ne.s32.totalorder %s4802_s16, %s3689_s21  ;;  %p3694_p10 = scmp.lt.u32.totalorder %s4802_s16, %s4897_s12 }
 0x6a1   : > { %p3695_p2 = scmp.lt.u32.totalorder %s3693_s17, %s3689_s21  ;;  %p3697_p4 = scmp.lt.u32.totalorder %s3689_s21, %s4802_s16 }
 0x6a2   : > { %p3691_p9 = pnand %p3690_p5, %p4898_p7 }
 0x6a3   : > { %p3696_p3 = por %p3695_p2, %p3694_p10 }
 0x6a4   : > { %p3692_p12 = pneg %p3691_p9 }
 0x6a5   : > { %p3698_p8 = por %p3697_p4, %p3696_p3 }
 0x6a7   : > { %p3699_p11 = pnand %p3698_p8, %p3692_p12 }
 0x6a9   : > { %3702 = shalt.err (!%p3699_p11)
}
 0x6aa   : > { %3041 = dma.vmem_to_hbm [thread:$0]  (%p4898_p7), %s4804_s24, 16, %s4802_s16, %s2499_s4  }
 0x6ab PF: > { %s4899_s25 = sld [smem:[#allocation22_spill]]  ;;  %s4900_s23 = sld [smem:[#allocation20_spill]] }
 0x6ac   : > { %s4901_s26 = sld [smem:[#allocation26_spill]] }
 0x6b1   : > { %p3078_p13 = scmp.ge.s32.totalorder %s4899_s25, 2  ;;  %s2523_s27 = sand.u32 1, %s4900_s23  }
 0x6b2   : > { %p4902_p1 = scmp.ne.s32.totalorder %s4901_s26, 0  ;;  %s2524_s20 = scalar_lea.sflag [#allocation5], %s2523_s27 }
 0x6b4   : > { %p3063_p0 = pnand %p3078_p13, %p4902_p1 }
 0x6b6   : > { %3736 = dma.done.wait (!%p3063_p0), %s2524_s20, 16  }
 0x6b7   : > { %3738 = vsyncadd (!%p3063_p0), %s2524_s20, 4294967280  ;;  %s4903_s30 = sld [smem:[#allocation23_spill]]  ;;  %s4904_s6 = sld [smem:[#allocation21_spill]] }
 0x6b8   : > { %s4905_s29 = sld [smem:[#allocation24_spill]]  ;;  %s4906_s27 = smov %s3745_s28 }
 0x6bd   : > { %p28_p6 = scmp.ge.s32.totalorder %s4903_s30, 4   ;;  %s4907_s28 = smov %s4904_s6 }
 0x6bf   :  { %30 = sbr.rel (!%p28_p6) target bundleno = 12 (0xc), region = 132 }
 0x6c6   :  { %2528 = vsyncpa [#allocation4], 1 }
 0x6c7   :  { %2530 = vsyncpa [#allocation4 + $0x1], 1 }
 0x6c8   :  { %2531 = vsyncpa [#allocation7], 1 }
 0x6c9   :  { %2532 = vsyncpa [#allocation10], 1 }
 0x6ca   :  { %2533 = vsyncpa [#allocation13], 1 }
 0x6cb   :  { %2534 = vsyncpa [#allocation5], 1 }
 0x6cc   :  { %2536 = vsyncpa [#allocation5 + $0x1], 1 }

</bundles_post_ra>
